<compile_context>
chip_gen: v7x
topology: tpu7x:2x2x1
jax: 0.10.0
libtpu: 0.0.40
codegen_flags: <defaults>
</compile_context>

<pallas_src>
import functools

import jax
import jax.numpy as jnp
from jax.experimental import pallas as pl
from jax.experimental.pallas import tpu as pltpu

_BUFFERED = getattr(pl, "Buffered", None)


def _round_up(x, m):
    return (x + m - 1) // m * m


# ---------------------------------------------------------------------------
# Kernel
# ---------------------------------------------------------------------------
def _mlp_cost_kernel(x_ref, w1_ref, b1_ref, w2_ref, b2_ref,
                     wl0_ref, bl0_ref, wl1_ref, bl1_ref,
                     wdt_ref, bd_ref, out_ref, *, tile_seg, seg_len, seg_len_pad):
    """One grid step: TILE_SEG segments -> encoder -> seg-sum -> residual MLP -> decoder."""
    cdt = w1_ref.dtype                                    # MXU streaming dtype (bf16 or f32)
    x = x_ref[...]                                        # (tile_seg*seg_len_pad, in_dim)

    # segment_encoder: Linear+ReLU, Linear+ReLU. MXU in `cdt`, accumulate/bias/ReLU in f32.
    h = jnp.dot(x, w1_ref[...], preferred_element_type=jnp.float32) + b1_ref[...]
    h = jnp.maximum(h, 0.0)
    h = jnp.dot(h.astype(cdt), w2_ref[...], preferred_element_type=jnp.float32) + b2_ref[...]
    h = jnp.maximum(h, 0.0)                               # f32 (rows, hidden_pad)

    # scatter_add over uniform segments == per-segment sum over seg_len rows.
    hidden = h.shape[-1]
    h3 = h.reshape(tile_seg, seg_len_pad, hidden)         # sublane-aligned (seg_len_pad % 8 == 0)
    if seg_len_pad != seg_len:
        # padded rows went through ReLU(bias) and are nonzero -> mask them before summing
        row = jax.lax.broadcasted_iota(jnp.int32, (tile_seg, seg_len_pad, hidden), 1)
        h3 = jnp.where(row < seg_len, h3, 0.0)
    s = h3.sum(axis=1)                                    # (tile_seg, hidden_pad) f32

    # norm = Identity (use_norm=False)

    # l0 / l1 residual blocks (residual add stays f32)
    t = jnp.maximum(jnp.dot(s.astype(cdt), wl0_ref[...],
                            preferred_element_type=jnp.float32) + bl0_ref[...], 0.0) + s
    t = jnp.maximum(jnp.dot(t.astype(cdt), wl1_ref[...],
                            preferred_element_type=jnp.float32) + bl1_ref[...], 0.0) + t

    # decoder, lane-dense: (out_dim, hidden_pad) x (tile_seg, hidden_pad)^T -> (out_dim, tile_seg)
    y = jnp.einsum("oh,sh->os", wdt_ref[...], t,
                   preferred_element_type=jnp.float32) + bd_ref[...]
    out_ref[...] = y


# ---------------------------------------------------------------------------
# Tiling / VMEM planning
# ---------------------------------------------------------------------------
def _vmem_capacity_bytes():
    try:
        cap = int(getattr(pltpu.get_tpu_info(), "vmem_capacity_bytes", 0) or 0)
        if cap > 0:
            return cap
    except Exception:
        pass
    return 64 << 20     # conservative fallback = v7x per-TensorCore


def _plan_tiling(n_seg, seg_len_pad, in_dim, hidden_pad, feat_bytes, w_bytes):
    """Pick segments-per-grid-step from an honest VMEM model; return tiling + vmem limit."""
    cap = _vmem_capacity_bytes()
    budget = max(8 << 20, min(cap - (16 << 20), int(cap * 0.6)))

    in_dim_lanes = _round_up(in_dim, 128)                 # VMEM lane padding of the feature tile
    weight_bytes = ((_round_up(in_dim, 8) * hidden_pad    # w1 (single-buffered)
                     + 3 * hidden_pad * hidden_pad) * w_bytes  # w2, wl0, wl1
                    + 6 * 8 * hidden_pad * 4)             # f32 biases + decoder row (sublane-padded)

    def footprint(tile, feat_buffers):
        rows = tile * seg_len_pad
        feat = feat_buffers * rows * in_dim_lanes * feat_bytes       # streamed feature tile
        act = 2 * rows * hidden_pad * 4 + rows * hidden_pad * w_bytes  # live encoder activations
        small = 4 * tile * hidden_pad * 4                            # seg-sum / residual tiles
        return weight_bytes + feat + act + small

    n_pad8 = _round_up(max(n_seg, 1), 8)
    if n_pad8 <= 128:
        tile = n_pad8                                      # tiny problem: one full-extent tile
    else:
        n_pad128 = _round_up(n_seg, 128)
        tile = min(2048, n_pad128)
        while tile > 128 and footprint(tile, 2) > budget:
            tile -= 128
        if n_pad128 >= 256 and tile >= n_pad128:
            # keep >=2 grid steps so ("parallel",) can shard across v7x's two TensorCores
            tile = _round_up(n_pad128 // 2, 128)

    n_grid = -(-max(n_seg, 1) // tile)
    n_seg_pad = n_grid * tile

    feat_buffers = 2
    if n_grid >= 3 and cap >= (96 << 20) and footprint(tile, 3) <= budget:
        feat_buffers = 3                                   # extra pipeline depth on v5e/v6e

    fp = footprint(tile, feat_buffers)
    vmem_limit = int(min(cap, max(32 << 20, fp + (8 << 20))))
    return tile, n_grid, n_seg_pad, feat_buffers, vmem_limit


# ---------------------------------------------------------------------------
# Wrapper
# ---------------------------------------------------------------------------
def mlp_cost_model_forward(features, params, *, compute_dtype=jnp.bfloat16):
    """features: [n_seg, seg_len, in_dim]. Returns [n_seg] f32 (decoder output, squeezed)."""
    n_seg, seg_len, in_dim = features.shape
    w1, b1, w2, b2, wl0, bl0, wl1, bl1, wd, bd = params
    hidden = w1.shape[1]
    out_dim = wd.shape[1]
    assert out_dim == 1, "wrapper returns a squeezed [n_seg] vector (decoder out_dim must be 1)"

    hidden_pad = _round_up(hidden, 128)                    # lane-full activations / MXU N dim
    seg_len_pad = _round_up(seg_len, 8)                    # sublane-aligned segment sum

    feat_bytes = jnp.dtype(compute_dtype).itemsize
    w_bytes = feat_bytes
    tile_seg, n_grid, n_seg_pad, feat_buffers, vmem_limit = _plan_tiling(
        n_seg, seg_len_pad, in_dim, hidden_pad, feat_bytes, w_bytes)

    # --- feature stream: cast / pad only when actually needed (each is an extra HBM pass) ---
    x = features if features.dtype == compute_dtype else features.astype(compute_dtype)
    if n_seg_pad != n_seg or seg_len_pad != seg_len:
        x = jnp.pad(x, ((0, n_seg_pad - n_seg), (0, seg_len_pad - seg_len), (0, 0)))
    flat = x.reshape(n_seg_pad * seg_len_pad, in_dim)

    # --- weights: zero-pad hidden to hidden_pad (numerically identical), big ones in bf16 ---
    def pad2(a, r, c):
        return jnp.pad(a, ((0, r - a.shape[0]), (0, c - a.shape[1])))

    w1p = pad2(w1, in_dim, hidden_pad).astype(compute_dtype)
    w2p = pad2(w2, hidden_pad, hidden_pad).astype(compute_dtype)
    wl0p = pad2(wl0, hidden_pad, hidden_pad).astype(compute_dtype)
    wl1p = pad2(wl1, hidden_pad, hidden_pad).astype(compute_dtype)
    b1p = pad2(b1, 1, hidden_pad).astype(jnp.float32)
    b2p = pad2(b2, 1, hidden_pad).astype(jnp.float32)
    bl0p = pad2(bl0, 1, hidden_pad).astype(jnp.float32)
    bl1p = pad2(bl1, 1, hidden_pad).astype(jnp.float32)
    wd_t = pad2(wd, hidden_pad, out_dim).T.astype(jnp.float32)   # (out_dim, hidden_pad)
    bd_c = bd.T.astype(jnp.float32)                              # (out_dim, 1)

    rows = n_seg_pad * seg_len_pad
    flops = (2 * rows * in_dim * hidden_pad
             + 2 * rows * hidden_pad * hidden_pad
             + 2 * 2 * n_seg_pad * hidden_pad * hidden_pad
             + 2 * n_seg_pad * hidden_pad * out_dim)
    consts = (w1p, b1p, w2p, b2p, wl0p, bl0p, wl1p, bl1p, wd_t, bd_c)
    weight_hbm = sum(int(p.size) * p.dtype.itemsize for p in consts)
    bytes_accessed = rows * in_dim * feat_bytes + weight_hbm + n_seg_pad * out_dim * 4

    kernel = functools.partial(_mlp_cost_kernel, tile_seg=tile_seg,
                               seg_len=seg_len, seg_len_pad=seg_len_pad)

    def build(single_buffer_consts, fbuf):
        def const_spec(shape):
            # same block every grid step -> resident in VMEM; single-buffer when supported
            idx = lambda i: (0,) * len(shape)
            if single_buffer_consts and _BUFFERED is not None:
                return pl.BlockSpec(shape, idx, pipeline_mode=_BUFFERED(1))
            return pl.BlockSpec(shape, idx)

        feat_kwargs = {}
        if fbuf != 2 and _BUFFERED is not None:
            feat_kwargs["pipeline_mode"] = _BUFFERED(fbuf)
        feat_spec = pl.BlockSpec((tile_seg * seg_len_pad, in_dim),
                                 lambda i: (i, 0), **feat_kwargs)

        return pl.pallas_call(
            kernel,
            out_shape=jax.ShapeDtypeStruct((out_dim, n_seg_pad), jnp.float32),
            grid=(n_grid,),
            in_specs=[feat_spec] + [const_spec(c.shape) for c in consts],
            # lane-dense per-tile output block -> unmasked stores; enables "parallel" sharding
            out_specs=pl.BlockSpec((out_dim, tile_seg), lambda i: (0, i)),
            compiler_params=pltpu.CompilerParams(
                dimension_semantics=("parallel",),
                vmem_limit_bytes=vmem_limit),
            cost_estimate=pl.CostEstimate(flops=int(flops), transcendentals=0,
                                          bytes_accessed=int(bytes_accessed)),
        )

    # Try the most aggressive config first, fall back if this jax version rejects it.
    last_err = None
    for cfg in dict.fromkeys([(True, feat_buffers), (True, 2), (False, 2)]):
        try:
            out = build(*cfg)(flat, *consts)
            out = jax.block_until_ready(out)
            return out[0, :n_seg]      # .squeeze(-1) with out_dim == 1, padding segments dropped
        except Exception as e:         # pragma: no cover — config fallback only
            last_err = e
    raise last_err


# ---------------------------------------------------------------------------
# Params / reference
# ---------------------------------------------------------------------------
def init_params(key, in_dim, hidden_dim, out_dim=1):
    """Deterministic synthetic init. Weights stored [in_features, out_features]."""
    ks = jax.random.split(key, 10)

    def lin(kw, kb, fan_in, fan_out):
        bound = 1.0 / jnp.sqrt(fan_in)
        w = jax.random.uniform(kw, (fan_in, fan_out), jnp.float32, -bound, bound)
        b = jax.random.uniform(kb, (1, fan_out), jnp.float32, -bound, bound)
        return w, b

    w1, b1 = lin(ks[0], ks[1], in_dim, hidden_dim)        # segment_encoder[0]
    w2, b2 = lin(ks[2], ks[3], hidden_dim, hidden_dim)    # segment_encoder[2]
    wl0, bl0 = lin(ks[4], ks[5], hidden_dim, hidden_dim)  # l0
    wl1, bl1 = lin(ks[6], ks[7], hidden_dim, hidden_dim)  # l1
    wd, bd = lin(ks[8], ks[9], hidden_dim, out_dim)       # decoder
    return (w1, b1, w2, b2, wl0, bl0, wl1, bl1, wd, bd)


def reference_forward(features, params):
    """Pure-JAX f32 reference mirroring forward_in_segments with uniform segments."""
    w1, b1, w2, b2, wl0, bl0, wl1, bl1, wd, bd = params
    n_seg, seg_len, in_dim = features.shape
    flat = features.reshape(n_seg * seg_len, in_dim)
    h = jnp.maximum(flat @ w1 + b1, 0.0)
    h = jnp.maximum(h @ w2 + b2, 0.0)
    seg_sum = h.reshape(n_seg, seg_len, -1).sum(axis=1)
    out = jnp.maximum(seg_sum @ wl0 + bl0, 0.0) + seg_sum
    out = jnp.maximum(out @ wl1 + bl1, 0.0) + out
    return (out @ wd + bd)[:, 0]


if __name__ == "__main__":
    key = jax.random.PRNGKey(0)
    k_feat, k_param = jax.random.split(key)

    n_seg, seg_len, in_dim, hidden_dim = 2, 8, 32, 32
    features = jax.random.normal(k_feat, (n_seg, seg_len, in_dim), jnp.float32)
    params = init_params(k_param, in_dim, hidden_dim, out_dim=1)

    ref = reference_forward(features, params)

    # f32 path: tight correctness anchor
    out_f32 = mlp_cost_model_forward(features, params, compute_dtype=jnp.float32)
    out_f32 = jax.block_until_ready(out_f32)
    assert out_f32.shape == (n_seg,)
    assert jnp.allclose(out_f32, ref, rtol=1e-4, atol=1e-4), (out_f32, ref)

    # bf16-stream path (default, bandwidth-optimized): relaxed tolerance vs f32 reference
    out_bf16 = mlp_cost_model_forward(features, params)
    out_bf16 = jax.block_until_ready(out_bf16)
    assert out_bf16.shape == (n_seg,)
    assert jnp.allclose(out_bf16, ref, rtol=5e-2, atol=5e-2), (out_bf16, ref)

    print("KERNEL_OK")
</pallas_src>

<mosaic_0001>
module attributes {stable_mosaic.version = 11 : i64} {
  func.func @_mlp_cost_kernel(%arg0: i32, %arg1: memref<64x32xf32, #tpu.memory_space<vmem>>, %arg2: memref<32x128xf32, #tpu.memory_space<vmem>>, %arg3: memref<1x128xf32, #tpu.memory_space<vmem>>, %arg4: memref<128x128xf32, #tpu.memory_space<vmem>>, %arg5: memref<1x128xf32, #tpu.memory_space<vmem>>, %arg6: memref<128x128xf32, #tpu.memory_space<vmem>>, %arg7: memref<1x128xf32, #tpu.memory_space<vmem>>, %arg8: memref<128x128xf32, #tpu.memory_space<vmem>>, %arg9: memref<1x128xf32, #tpu.memory_space<vmem>>, %arg10: memref<1x128xf32, #tpu.memory_space<vmem>>, %arg11: memref<1x1xf32, #tpu.memory_space<vmem>>, %arg12: memref<1x8xf32, #tpu.memory_space<vmem>>) attributes {dimension_semantics = [#tpu.dimension_semantics<parallel>], iteration_bounds = array<i64: 1>, scalar_prefetch = 0 : i64, scratch_operands = 0 : i64, tpu.core_type = #tpu.core_type<tc>, window_params = [{transform_indices = @transform_0, window_bounds = array<i64: 64, 32>}, {pipeline_mode = #tpu.pipeline_mode<synchronous>, transform_indices = @transform_1, window_bounds = array<i64: 32, 128>}, {pipeline_mode = #tpu.pipeline_mode<synchronous>, transform_indices = @transform_2, window_bounds = array<i64: 1, 128>}, {pipeline_mode = #tpu.pipeline_mode<synchronous>, transform_indices = @transform_3, window_bounds = array<i64: 128, 128>}, {pipeline_mode = #tpu.pipeline_mode<synchronous>, transform_indices = @transform_4, window_bounds = array<i64: 1, 128>}, {pipeline_mode = #tpu.pipeline_mode<synchronous>, transform_indices = @transform_5, window_bounds = array<i64: 128, 128>}, {pipeline_mode = #tpu.pipeline_mode<synchronous>, transform_indices = @transform_6, window_bounds = array<i64: 1, 128>}, {pipeline_mode = #tpu.pipeline_mode<synchronous>, transform_indices = @transform_7, window_bounds = array<i64: 128, 128>}, {pipeline_mode = #tpu.pipeline_mode<synchronous>, transform_indices = @transform_8, window_bounds = array<i64: 1, 128>}, {pipeline_mode = #tpu.pipeline_mode<synchronous>, transform_indices = @transform_9, window_bounds = array<i64: 1, 128>}, {pipeline_mode = #tpu.pipeline_mode<synchronous>, transform_indices = @transform_10, window_bounds = array<i64: 1, 1>}, {transform_indices = @transform_11, window_bounds = array<i64: 1, 8>}]} {
    %c0 = arith.constant 0 : index
    %c0_0 = arith.constant 0 : index
    %0 = vector.load %arg1[%c0, %c0_0] : memref<64x32xf32, #tpu.memory_space<vmem>>, vector<64x32xf32>
    %c0_1 = arith.constant 0 : index
    %c0_2 = arith.constant 0 : index
    %1 = vector.load %arg2[%c0_1, %c0_2] : memref<32x128xf32, #tpu.memory_space<vmem>>, vector<32x128xf32>
    %cst = arith.constant dense<0.000000e+00> : vector<64x128xf32>
    %2 = tpu.matmul %0, %1, %cst {dimension_numbers = #tpu.dot_dimension_numbers<[1], [0], [0], [1], [0, 0, 1, 1], [], []>} : vector<64x32xf32>, vector<32x128xf32>, vector<64x128xf32> -> vector<64x128xf32>
    %c0_3 = arith.constant 0 : index
    %c0_4 = arith.constant 0 : index
    %3 = vector.load %arg3[%c0_3, %c0_4] : memref<1x128xf32, #tpu.memory_space<vmem>>, vector<1x128xf32>
    %4 = vector.broadcast %3 : vector<1x128xf32> to vector<64x128xf32>
    %5 = arith.addf %2, %4 : vector<64x128xf32>
    %cst_5 = arith.constant 0.000000e+00 : f32
    %6 = vector.broadcast %cst_5 : f32 to vector<64x128xf32>
    %7 = arith.maximumf %5, %6 : vector<64x128xf32>
    %c0_6 = arith.constant 0 : index
    %c0_7 = arith.constant 0 : index
    %8 = vector.load %arg4[%c0_6, %c0_7] : memref<128x128xf32, #tpu.memory_space<vmem>>, vector<128x128xf32>
    %cst_8 = arith.constant dense<0.000000e+00> : vector<64x128xf32>
    %9 = tpu.matmul %7, %8, %cst_8 {dimension_numbers = #tpu.dot_dimension_numbers<[1], [0], [0], [1], [0, 0, 1, 1], [], []>} : vector<64x128xf32>, vector<128x128xf32>, vector<64x128xf32> -> vector<64x128xf32>
    %c0_9 = arith.constant 0 : index
    %c0_10 = arith.constant 0 : index
    %10 = vector.load %arg5[%c0_9, %c0_10] : memref<1x128xf32, #tpu.memory_space<vmem>>, vector<1x128xf32>
    %11 = vector.broadcast %10 : vector<1x128xf32> to vector<64x128xf32>
    %12 = arith.addf %9, %11 : vector<64x128xf32>
    %cst_11 = arith.constant 0.000000e+00 : f32
    %13 = vector.broadcast %cst_11 : f32 to vector<64x128xf32>
    %14 = arith.maximumf %12, %13 : vector<64x128xf32>
    %15 = vector.shape_cast %14 : vector<64x128xf32> to vector<8x8x128xf32>
    %cst_12 = arith.constant dense<0.000000e+00> : vector<8x128xf32>
    %16 = vector.multi_reduction <add>, %15, %cst_12 [1] : vector<8x8x128xf32> to vector<8x128xf32>
    %c0_13 = arith.constant 0 : index
    %c0_14 = arith.constant 0 : index
    %17 = vector.load %arg6[%c0_13, %c0_14] : memref<128x128xf32, #tpu.memory_space<vmem>>, vector<128x128xf32>
    %cst_15 = arith.constant dense<0.000000e+00> : vector<8x128xf32>
    %18 = tpu.matmul %16, %17, %cst_15 {dimension_numbers = #tpu.dot_dimension_numbers<[1], [0], [0], [1], [0, 0, 1, 1], [], []>} : vector<8x128xf32>, vector<128x128xf32>, vector<8x128xf32> -> vector<8x128xf32>
    %c0_16 = arith.constant 0 : index
    %c0_17 = arith.constant 0 : index
    %19 = vector.load %arg7[%c0_16, %c0_17] : memref<1x128xf32, #tpu.memory_space<vmem>>, vector<1x128xf32>
    %20 = vector.broadcast %19 : vector<1x128xf32> to vector<8x128xf32>
    %21 = arith.addf %18, %20 : vector<8x128xf32>
    %cst_18 = arith.constant 0.000000e+00 : f32
    %22 = vector.broadcast %cst_18 : f32 to vector<8x128xf32>
    %23 = arith.maximumf %21, %22 : vector<8x128xf32>
    %24 = arith.addf %23, %16 : vector<8x128xf32>
    %c0_19 = arith.constant 0 : index
    %c0_20 = arith.constant 0 : index
    %25 = vector.load %arg8[%c0_19, %c0_20] : memref<128x128xf32, #tpu.memory_space<vmem>>, vector<128x128xf32>
    %cst_21 = arith.constant dense<0.000000e+00> : vector<8x128xf32>
    %26 = tpu.matmul %24, %25, %cst_21 {dimension_numbers = #tpu.dot_dimension_numbers<[1], [0], [0], [1], [0, 0, 1, 1], [], []>} : vector<8x128xf32>, vector<128x128xf32>, vector<8x128xf32> -> vector<8x128xf32>
    %c0_22 = arith.constant 0 : index
    %c0_23 = arith.constant 0 : index
    %27 = vector.load %arg9[%c0_22, %c0_23] : memref<1x128xf32, #tpu.memory_space<vmem>>, vector<1x128xf32>
    %28 = vector.broadcast %27 : vector<1x128xf32> to vector<8x128xf32>
    %29 = arith.addf %26, %28 : vector<8x128xf32>
    %cst_24 = arith.constant 0.000000e+00 : f32
    %30 = vector.broadcast %cst_24 : f32 to vector<8x128xf32>
    %31 = arith.maximumf %29, %30 : vector<8x128xf32>
    %32 = arith.addf %31, %24 : vector<8x128xf32>
    %c0_25 = arith.constant 0 : index
    %c0_26 = arith.constant 0 : index
    %33 = vector.load %arg10[%c0_25, %c0_26] : memref<1x128xf32, #tpu.memory_space<vmem>>, vector<1x128xf32>
    "tpu.trace_start"() <{level = 10 : i32, message = "oh,sh->os"}> : () -> ()
    %cst_27 = arith.constant dense<0.000000e+00> : vector<1x8xf32>
    %34 = tpu.matmul %33, %32, %cst_27 {dimension_numbers = #tpu.dot_dimension_numbers<[1], [1], [0], [0], [0, 0, 1, 0], [], []>} : vector<1x128xf32>, vector<8x128xf32>, vector<1x8xf32> -> vector<1x8xf32>
    "tpu.trace_stop"() : () -> ()
    %c0_28 = arith.constant 0 : index
    %c0_29 = arith.constant 0 : index
    %35 = vector.load %arg11[%c0_28, %c0_29] : memref<1x1xf32, #tpu.memory_space<vmem>>, vector<1x1xf32>
    %36 = vector.broadcast %35 : vector<1x1xf32> to vector<1x8xf32>
    %37 = arith.addf %34, %36 : vector<1x8xf32>
    %c0_30 = arith.constant 0 : index
    %c0_31 = arith.constant 0 : index
    %38 = vector.load %arg12[%c0_30, %c0_31] : memref<1x8xf32, #tpu.memory_space<vmem>>, vector<1x8xf32>
    tpu.vector_store %arg12[%c0_30, %c0_31], %37 {strides = array<i32>} : memref<1x8xf32, #tpu.memory_space<vmem>>, vector<1x8xf32>,
    return
  }
  func.func @transform_0(%arg0: i32) -> (i32, i32) {
    %c0_i32 = arith.constant 0 : i32
    %c0_i32_0 = arith.constant 0 : i32
    return %arg0, %c0_i32 : i32, i32
  }
  func.func @transform_1(%arg0: i32) -> (i32, i32) {
    %c0_i32 = arith.constant 0 : i32
    %c0_i32_0 = arith.constant 0 : i32
    %c0_i32_1 = arith.constant 0 : i32
    return %c0_i32, %c0_i32_0 : i32, i32
  }
  func.func @transform_2(%arg0: i32) -> (i32, i32) {
    %c0_i32 = arith.constant 0 : i32
    %c0_i32_0 = arith.constant 0 : i32
    %c0_i32_1 = arith.constant 0 : i32
    return %c0_i32, %c0_i32_0 : i32, i32
  }
  func.func @transform_3(%arg0: i32) -> (i32, i32) {
    %c0_i32 = arith.constant 0 : i32
    %c0_i32_0 = arith.constant 0 : i32
    %c0_i32_1 = arith.constant 0 : i32
    return %c0_i32, %c0_i32_0 : i32, i32
  }
  func.func @transform_4(%arg0: i32) -> (i32, i32) {
    %c0_i32 = arith.constant 0 : i32
    %c0_i32_0 = arith.constant 0 : i32
    %c0_i32_1 = arith.constant 0 : i32
    return %c0_i32, %c0_i32_0 : i32, i32
  }
  func.func @transform_5(%arg0: i32) -> (i32, i32) {
    %c0_i32 = arith.constant 0 : i32
    %c0_i32_0 = arith.constant 0 : i32
    %c0_i32_1 = arith.constant 0 : i32
    return %c0_i32, %c0_i32_0 : i32, i32
  }
  func.func @transform_6(%arg0: i32) -> (i32, i32) {
    %c0_i32 = arith.constant 0 : i32
    %c0_i32_0 = arith.constant 0 : i32
    %c0_i32_1 = arith.constant 0 : i32
    return %c0_i32, %c0_i32_0 : i32, i32
  }
  func.func @transform_7(%arg0: i32) -> (i32, i32) {
    %c0_i32 = arith.constant 0 : i32
    %c0_i32_0 = arith.constant 0 : i32
    %c0_i32_1 = arith.constant 0 : i32
    return %c0_i32, %c0_i32_0 : i32, i32
  }
  func.func @transform_8(%arg0: i32) -> (i32, i32) {
    %c0_i32 = arith.constant 0 : i32
    %c0_i32_0 = arith.constant 0 : i32
    %c0_i32_1 = arith.constant 0 : i32
    return %c0_i32, %c0_i32_0 : i32, i32
  }
  func.func @transform_9(%arg0: i32) -> (i32, i32) {
    %c0_i32 = arith.constant 0 : i32
    %c0_i32_0 = arith.constant 0 : i32
    %c0_i32_1 = arith.constant 0 : i32
    return %c0_i32, %c0_i32_0 : i32, i32
  }
  func.func @transform_10(%arg0: i32) -> (i32, i32) {
    %c0_i32 = arith.constant 0 : i32
    %c0_i32_0 = arith.constant 0 : i32
    %c0_i32_1 = arith.constant 0 : i32
    return %c0_i32, %c0_i32_0 : i32, i32
  }
  func.func @transform_11(%arg0: i32) -> (i32, i32) {
    %c0_i32 = arith.constant 0 : i32
    %c0_i32_0 = arith.constant 0 : i32
    return %c0_i32, %arg0 : i32, i32
  }
}

module attributes {stable_mosaic.version = 11 : i64} {
  func.func @_mlp_cost_kernel(%arg0: i32, %arg1: memref<64x32xf32, #tpu.memory_space<vmem>>, %arg2: memref<32x128xf32, #tpu.memory_space<vmem>>, %arg3: memref<1x128xf32, #tpu.memory_space<vmem>>, %arg4: memref<128x128xf32, #tpu.memory_space<vmem>>, %arg5: memref<1x128xf32, #tpu.memory_space<vmem>>, %arg6: memref<128x128xf32, #tpu.memory_space<vmem>>, %arg7: memref<1x128xf32, #tpu.memory_space<vmem>>, %arg8: memref<128x128xf32, #tpu.memory_space<vmem>>, %arg9: memref<1x128xf32, #tpu.memory_space<vmem>>, %arg10: memref<1x128xf32, #tpu.memory_space<vmem>>, %arg11: memref<1x1xf32, #tpu.memory_space<vmem>>, %arg12: memref<1x8xf32, #tpu.memory_space<vmem>>) attributes {dimension_semantics = [#tpu.dimension_semantics<parallel>], iteration_bounds = array<i64: 1>, scalar_prefetch = 0 : i64, scratch_operands = 0 : i64, tpu.core_type = #tpu.core_type<tc>, window_params = [{transform_indices = @transform_0, window_bounds = array<i64: 64, 32>}, {pipeline_mode = #tpu.pipeline_mode<synchronous>, transform_indices = @transform_1, window_bounds = array<i64: 32, 128>}, {pipeline_mode = #tpu.pipeline_mode<synchronous>, transform_indices = @transform_2, window_bounds = array<i64: 1, 128>}, {pipeline_mode = #tpu.pipeline_mode<synchronous>, transform_indices = @transform_3, window_bounds = array<i64: 128, 128>}, {pipeline_mode = #tpu.pipeline_mode<synchronous>, transform_indices = @transform_4, window_bounds = array<i64: 1, 128>}, {pipeline_mode = #tpu.pipeline_mode<synchronous>, transform_indices = @transform_5, window_bounds = array<i64: 128, 128>}, {pipeline_mode = #tpu.pipeline_mode<synchronous>, transform_indices = @transform_6, window_bounds = array<i64: 1, 128>}, {pipeline_mode = #tpu.pipeline_mode<synchronous>, transform_indices = @transform_7, window_bounds = array<i64: 128, 128>}, {pipeline_mode = #tpu.pipeline_mode<synchronous>, transform_indices = @transform_8, window_bounds = array<i64: 1, 128>}, {pipeline_mode = #tpu.pipeline_mode<synchronous>, transform_indices = @transform_9, window_bounds = array<i64: 1, 128>}, {pipeline_mode = #tpu.pipeline_mode<synchronous>, transform_indices = @transform_10, window_bounds = array<i64: 1, 1>}, {transform_indices = @transform_11, window_bounds = array<i64: 1, 8>}]} {
    %c0 = arith.constant 0 : index
    %c0_0 = arith.constant 0 : index
    %0 = vector.load %arg1[%c0, %c0_0] : memref<64x32xf32, #tpu.memory_space<vmem>>, vector<64x32xf32>
    %c0_1 = arith.constant 0 : index
    %c0_2 = arith.constant 0 : index
    %1 = vector.load %arg2[%c0_1, %c0_2] : memref<32x128xf32, #tpu.memory_space<vmem>>, vector<32x128xf32>
    %cst = arith.constant dense<0.000000e+00> : vector<64x128xf32>
    %2 = tpu.matmul %0, %1, %cst {dimension_numbers = #tpu.dot_dimension_numbers<[1], [0], [0], [1], [0, 0, 1, 1], [], []>} : vector<64x32xf32>, vector<32x128xf32>, vector<64x128xf32> -> vector<64x128xf32>
    %c0_3 = arith.constant 0 : index
    %c0_4 = arith.constant 0 : index
    %3 = vector.load %arg3[%c0_3, %c0_4] : memref<1x128xf32, #tpu.memory_space<vmem>>, vector<1x128xf32>
    %4 = vector.broadcast %3 : vector<1x128xf32> to vector<64x128xf32>
    %5 = arith.addf %2, %4 : vector<64x128xf32>
    %cst_5 = arith.constant 0.000000e+00 : f32
    %6 = vector.broadcast %cst_5 : f32 to vector<64x128xf32>
    %7 = arith.maximumf %5, %6 : vector<64x128xf32>
    %c0_6 = arith.constant 0 : index
    %c0_7 = arith.constant 0 : index
    %8 = vector.load %arg4[%c0_6, %c0_7] : memref<128x128xf32, #tpu.memory_space<vmem>>, vector<128x128xf32>
    %cst_8 = arith.constant dense<0.000000e+00> : vector<64x128xf32>
    %9 = tpu.matmul %7, %8, %cst_8 {dimension_numbers = #tpu.dot_dimension_numbers<[1], [0], [0], [1], [0, 0, 1, 1], [], []>} : vector<64x128xf32>, vector<128x128xf32>, vector<64x128xf32> -> vector<64x128xf32>
    %c0_9 = arith.constant 0 : index
    %c0_10 = arith.constant 0 : index
    %10 = vector.load %arg5[%c0_9, %c0_10] : memref<1x128xf32, #tpu.memory_space<vmem>>, vector<1x128xf32>
    %11 = vector.broadcast %10 : vector<1x128xf32> to vector<64x128xf32>
    %12 = arith.addf %9, %11 : vector<64x128xf32>
    %cst_11 = arith.constant 0.000000e+00 : f32
    %13 = vector.broadcast %cst_11 : f32 to vector<64x128xf32>
    %14 = arith.maximumf %12, %13 : vector<64x128xf32>
    %15 = vector.shape_cast %14 : vector<64x128xf32> to vector<8x8x128xf32>
    %cst_12 = arith.constant dense<0.000000e+00> : vector<8x128xf32>
    %16 = vector.multi_reduction <add>, %15, %cst_12 [1] : vector<8x8x128xf32> to vector<8x128xf32>
    %c0_13 = arith.constant 0 : index
    %c0_14 = arith.constant 0 : index
    %17 = vector.load %arg6[%c0_13, %c0_14] : memref<128x128xf32, #tpu.memory_space<vmem>>, vector<128x128xf32>
    %cst_15 = arith.constant dense<0.000000e+00> : vector<8x128xf32>
    %18 = tpu.matmul %16, %17, %cst_15 {dimension_numbers = #tpu.dot_dimension_numbers<[1], [0], [0], [1], [0, 0, 1, 1], [], []>} : vector<8x128xf32>, vector<128x128xf32>, vector<8x128xf32> -> vector<8x128xf32>
    %c0_16 = arith.constant 0 : index
    %c0_17 = arith.constant 0 : index
    %19 = vector.load %arg7[%c0_16, %c0_17] : memref<1x128xf32, #tpu.memory_space<vmem>>, vector<1x128xf32>
    %20 = vector.broadcast %19 : vector<1x128xf32> to vector<8x128xf32>
    %21 = arith.addf %18, %20 : vector<8x128xf32>
    %cst_18 = arith.constant 0.000000e+00 : f32
    %22 = vector.broadcast %cst_18 : f32 to vector<8x128xf32>
    %23 = arith.maximumf %21, %22 : vector<8x128xf32>
    %24 = arith.addf %23, %16 : vector<8x128xf32>
    %c0_19 = arith.constant 0 : index
    %c0_20 = arith.constant 0 : index
    %25 = vector.load %arg8[%c0_19, %c0_20] : memref<128x128xf32, #tpu.memory_space<vmem>>, vector<128x128xf32>
    %cst_21 = arith.constant dense<0.000000e+00> : vector<8x128xf32>
    %26 = tpu.matmul %24, %25, %cst_21 {dimension_numbers = #tpu.dot_dimension_numbers<[1], [0], [0], [1], [0, 0, 1, 1], [], []>} : vector<8x128xf32>, vector<128x128xf32>, vector<8x128xf32> -> vector<8x128xf32>
    %c0_22 = arith.constant 0 : index
    %c0_23 = arith.constant 0 : index
    %27 = vector.load %arg9[%c0_22, %c0_23] : memref<1x128xf32, #tpu.memory_space<vmem>>, vector<1x128xf32>
    %28 = vector.broadcast %27 : vector<1x128xf32> to vector<8x128xf32>
    %29 = arith.addf %26, %28 : vector<8x128xf32>
    %cst_24 = arith.constant 0.000000e+00 : f32
    %30 = vector.broadcast %cst_24 : f32 to vector<8x128xf32>
    %31 = arith.maximumf %29, %30 : vector<8x128xf32>
    %32 = arith.addf %31, %24 : vector<8x128xf32>
    %c0_25 = arith.constant 0 : index
    %c0_26 = arith.constant 0 : index
    %33 = vector.load %arg10[%c0_25, %c0_26] : memref<1x128xf32, #tpu.memory_space<vmem>>, vector<1x128xf32>
    "tpu.trace_start"() <{level = 10 : i32, message = "oh,sh->os"}> : () -> ()
    %cst_27 = arith.constant dense<0.000000e+00> : vector<1x8xf32>
    %34 = tpu.matmul %33, %32, %cst_27 {dimension_numbers = #tpu.dot_dimension_numbers<[1], [1], [0], [0], [0, 0, 1, 0], [], []>} : vector<1x128xf32>, vector<8x128xf32>, vector<1x8xf32> -> vector<1x8xf32>
    "tpu.trace_stop"() : () -> ()
    %c0_28 = arith.constant 0 : index
    %c0_29 = arith.constant 0 : index
    %35 = vector.load %arg11[%c0_28, %c0_29] : memref<1x1xf32, #tpu.memory_space<vmem>>, vector<1x1xf32>
    %36 = vector.broadcast %35 : vector<1x1xf32> to vector<1x8xf32>
    %37 = arith.addf %34, %36 : vector<1x8xf32>
    %c0_30 = arith.constant 0 : index
    %c0_31 = arith.constant 0 : index
    %38 = vector.load %arg12[%c0_30, %c0_31] : memref<1x8xf32, #tpu.memory_space<vmem>>, vector<1x8xf32>
    tpu.vector_store %arg12[%c0_30, %c0_31], %37 {strides = array<i32>} : memref<1x8xf32, #tpu.memory_space<vmem>>, vector<1x8xf32>,
    return
  }
  func.func @transform_0(%arg0: i32) -> (i32, i32) {
    %c0_i32 = arith.constant 0 : i32
    %c0_i32_0 = arith.constant 0 : i32
    return %arg0, %c0_i32 : i32, i32
  }
  func.func @transform_1(%arg0: i32) -> (i32, i32) {
    %c0_i32 = arith.constant 0 : i32
    %c0_i32_0 = arith.constant 0 : i32
    %c0_i32_1 = arith.constant 0 : i32
    return %c0_i32, %c0_i32_0 : i32, i32
  }
  func.func @transform_2(%arg0: i32) -> (i32, i32) {
    %c0_i32 = arith.constant 0 : i32
    %c0_i32_0 = arith.constant 0 : i32
    %c0_i32_1 = arith.constant 0 : i32
    return %c0_i32, %c0_i32_0 : i32, i32
  }
  func.func @transform_3(%arg0: i32) -> (i32, i32) {
    %c0_i32 = arith.constant 0 : i32
    %c0_i32_0 = arith.constant 0 : i32
    %c0_i32_1 = arith.constant 0 : i32
    return %c0_i32, %c0_i32_0 : i32, i32
  }
  func.func @transform_4(%arg0: i32) -> (i32, i32) {
    %c0_i32 = arith.constant 0 : i32
    %c0_i32_0 = arith.constant 0 : i32
    %c0_i32_1 = arith.constant 0 : i32
    return %c0_i32, %c0_i32_0 : i32, i32
  }
  func.func @transform_5(%arg0: i32) -> (i32, i32) {
    %c0_i32 = arith.constant 0 : i32
    %c0_i32_0 = arith.constant 0 : i32
    %c0_i32_1 = arith.constant 0 : i32
    return %c0_i32, %c0_i32_0 : i32, i32
  }
  func.func @transform_6(%arg0: i32) -> (i32, i32) {
    %c0_i32 = arith.constant 0 : i32
    %c0_i32_0 = arith.constant 0 : i32
    %c0_i32_1 = arith.constant 0 : i32
    return %c0_i32, %c0_i32_0 : i32, i32
  }
  func.func @transform_7(%arg0: i32) -> (i32, i32) {
    %c0_i32 = arith.constant 0 : i32
    %c0_i32_0 = arith.constant 0 : i32
    %c0_i32_1 = arith.constant 0 : i32
    return %c0_i32, %c0_i32_0 : i32, i32
  }
  func.func @transform_8(%arg0: i32) -> (i32, i32) {
    %c0_i32 = arith.constant 0 : i32
    %c0_i32_0 = arith.constant 0 : i32
    %c0_i32_1 = arith.constant 0 : i32
    return %c0_i32, %c0_i32_0 : i32, i32
  }
  func.func @transform_9(%arg0: i32) -> (i32, i32) {
    %c0_i32 = arith.constant 0 : i32
    %c0_i32_0 = arith.constant 0 : i32
    %c0_i32_1 = arith.constant 0 : i32
    return %c0_i32, %c0_i32_0 : i32, i32
  }
  func.func @transform_10(%arg0: i32) -> (i32, i32) {
    %c0_i32 = arith.constant 0 : i32
    %c0_i32_0 = arith.constant 0 : i32
    %c0_i32_1 = arith.constant 0 : i32
    return %c0_i32, %c0_i32_0 : i32, i32
  }
  func.func @transform_11(%arg0: i32) -> (i32, i32) {
    %c0_i32 = arith.constant 0 : i32
    %c0_i32_0 = arith.constant 0 : i32
    return %c0_i32, %arg0 : i32, i32
  }
}

</mosaic_0001>

<bundles_post_ra>
// kernel: tpu_custom_call.1
= control target key start
LH: loop header
LB: loop body
LE: loop exit
PB: predicated region body
PF: predicated region fallthrough
CT: control target
= control target key end

     0   :  { %s1371_s0 = inlined_call_operand.vmem [shape: f32[64,32], index: 0, kind: input, shape index: {}]   ;;  %s1372_s1 = inlined_call_operand.vmem [shape: f32[32,128], index: 1, kind: input, shape index: {}]   ;;  %s1373_s2 = inlined_call_operand.vmem [shape: f32[1,128], index: 2, kind: input, shape index: {}]   ;;  %s1374_s3 = inlined_call_operand.hbm [shape: f32[128,128], index: 3, kind: input, shape index: {}]   ;;  %s1375_s4 = inlined_call_operand.vmem [shape: f32[1,128], index: 4, kind: input, shape index: {}]   ;;  %s1376_s5 = inlined_call_operand.hbm [shape: f32[128,128], index: 5, kind: input, shape index: {}]   ;;  %s1377_s6 = inlined_call_operand.vmem [shape: f32[1,128], index: 6, kind: input, shape index: {}]   ;;  %s1378_s7 = inlined_call_operand.hbm [shape: f32[128,128], index: 7, kind: input, shape index: {}]   ;;  %s1379_s8 = inlined_call_operand.vmem [shape: f32[1,128], index: 8, kind: input, shape index: {}]   ;;  %s1380_s9 = inlined_call_operand.vmem [shape: f32[1,128], index: 9, kind: input, shape index: {}]   ;;  %s1381_s10 = inlined_call_operand.<no memory space> [shape: f32[1,1], index: 10, kind: input, shape index: {}]   ;;  %s1382_s11 = inlined_call_operand.hbm [shape: f32[1,8], index: 11, kind: output, shape index: {}]  }
   0x1   :  { %v16_v0 = vstv %s1381_s10 }
   0x2   :  { %17 = vst [vmem:[#allocation2] sm:$0x1] %v16_v0 }
   0x3   :  { %18 = vsyncpa [#allocation4], 0 }
   0x4   :  { %19 = vsyncpa [#allocation7], 0 }
   0x5   :  { %20 = vsyncpa [#allocation5], 0  ;;  %s1151_s19 = smov [#allocation6]   ;;  %s1152_s21 = smov [#allocation3]  }
   0x6   :  { %s46_s20 = sshll.u32 %s1151_s19, 4  ;;  %s32_s22 = sshll.u32 %s1152_s21, 4  ;;  %s47_s20 = int_to_ptr.vmem [resolvable:$true] %s46_s20  ;;  %s1224_s22 = int_to_ptr.vmem [resolvable:$true] %s32_s22 }
   0x7   :  { %s1057_s25 = scalar_lea.hbm %s1376_s5, 2048 }
   0x8   :  { %p1058_p0 = scmp.ne.s32.totalorder %s1376_s5, %s1057_s25  ;;  %p1061_p1 = scmp.lt.u32.totalorder %s1057_s25, %s1376_s5 }
   0xa   :  { %p1063_p2 = pnand %p1061_p1, %p1058_p0 }
   0xc   :  { %1066 = shalt.err (!%p1063_p2)
}
   0xd   :  { %s1067_s29 = scalar_lea.vmem %s47_s20, 2048  ;;  %p1072_p4 = scmp.lt.s32.totalorder %s47_s20, %s47_s20 }
   0xe   :  { %p1068_p3 = scmp.ne.s32.totalorder %s47_s20, %s1067_s29  ;;  %p1073_p5 = scmp.lt.s32.totalorder %s1067_s29, %s1067_s29 }
  0x10   :  { %p1074_p6 = por %p1073_p5, %p1072_p4 }
  0x12   :  { %p1075_p7 = pnand %p1074_p6, %p1068_p3 }
  0x14   :  { %1078 = shalt.err (!%p1075_p7)
}
  0x15   :  { %s1153_s30 = smov 128   ;;  %s1154_s12 = smov 8  }
  0x16   :  { %52 = dma.hbm_to_vmem [thread:$0]  %s1376_s5, 2048, %s47_s20, [#allocation7], %s1153_s30, %s1153_s30, %s1154_s12  }
  0x17   :  { %s1079_s17 = scalar_lea.hbm %s1374_s3, 2048 }
  0x18   :  { %p1080_p8 = scmp.ne.s32.totalorder %s1374_s3, %s1079_s17  ;;  %p1083_p9 = scmp.lt.u32.totalorder %s1079_s17, %s1374_s3 }
  0x1a   :  { %p1085_p10 = pnand %p1083_p9, %p1080_p8 }
  0x1c   :  { %1088 = shalt.err (!%p1085_p10)
}
  0x1d   :  { %s1089_s24 = scalar_lea.vmem %s1224_s22, 2048  ;;  %p1094_p12 = scmp.lt.s32.totalorder %s1224_s22, %s1224_s22 }
  0x1e   :  { %p1090_p11 = scmp.ne.s32.totalorder %s1224_s22, %s1089_s24  ;;  %p1095_p13 = scmp.lt.s32.totalorder %s1089_s24, %s1089_s24 }
  0x20   :  { %p1096_p0 = por %p1095_p13, %p1094_p12 }
  0x22   :  { %p1097_p1 = pnand %p1096_p0, %p1090_p11 }
  0x24   :  { %1100 = shalt.err (!%p1097_p1)
}
  0x25   :  { %38 = dma.hbm_to_vmem [thread:$0]  %s1374_s3, 2048, %s1224_s22, [#allocation4], %s1153_s30, %s1153_s30, %s1154_s12  }
  0x26   :  { %s1155_s25 = smov [#allocation8]   ;;  %s1101_s28 = scalar_lea.hbm %s1378_s7, 2048 }
  0x27   :  { %s60_s26 = sshll.u32 %s1155_s25, 4  ;;  %p1102_p2 = scmp.ne.s32.totalorder %s1378_s7, %s1101_s28  ;;  %s61_s26 = int_to_ptr.vmem [resolvable:$true] %s60_s26 }
  0x28   :  { %p1105_p3 = scmp.lt.u32.totalorder %s1101_s28, %s1378_s7 }
  0x2a   :  { %p1107_p4 = pnand %p1105_p3, %p1102_p2 }
  0x2c   :  { %1110 = shalt.err (!%p1107_p4)
}
  0x2d   :  { %s1111_s16 = scalar_lea.vmem %s61_s26, 2048  ;;  %p1116_p6 = scmp.lt.s32.totalorder %s61_s26, %s61_s26 }
  0x2e   :  { %p1112_p5 = scmp.ne.s32.totalorder %s61_s26, %s1111_s16  ;;  %p1117_p7 = scmp.lt.s32.totalorder %s1111_s16, %s1111_s16 }
  0x30   :  { %p1118_p8 = por %p1117_p7, %p1116_p6 }
  0x32   :  { %p1119_p9 = pnand %p1118_p8, %p1112_p5 }
  0x34   :  { %1122 = shalt.err (!%p1119_p9)
}
  0x35   :  { %66 = dma.hbm_to_vmem [thread:$0]  %s1378_s7, 2048, %s61_s26, [#allocation7], %s1153_s30, %s1153_s30, %s1154_s12  }
  0x36   :  { %1145 = dma.done.wait [#allocation4], 2048  }
  0x37   :  { %1146 = vsyncadd [#allocation4], 4294965248 }
  0x38   :  { %1147 = dma.done.wait [#allocation7], 4096  }
  0x39   :  { %1148 = vsyncadd [#allocation7], 4294963200  ;;  %vm101_vm0 = vcmask 261120   ;;  %v90_v1 = vld [vmem:[%s1372_s1] sm:$0xff]  ;;  %v91_v2 = vld [vmem:[%s1372_s1 + $0x8] sm:$0xff]  ;;  %vm1157_vm1 = vmmov 0  }
  0x3a   :  { %v92_v3 = vld [vmem:[%s1372_s1 + $0x10] sm:$0xff]  ;;  %v958_v4 = vpack.c.bf16 %v91_v2, %v90_v1  ;;  %v93_v5 = vld [vmem:[%s1372_s1 + $0x18] sm:$0xff]  ;;  %v82_v6 = vld [vmem:[%s1371_s0] sm:$0xff]  ;;  %vm454_vm2 = vcmask 1041409   ;;  %vm456_vm3 = vcmask 1042434   ;;  %vm458_vm4 = vcmask 1043459  }
  0x3b   :  { %v962_v7 = vpack.c.bf16 %v93_v5, %v92_v3  ;;  %827 = vmatprep.mubr.msk.f32.mxu0 %vm101_vm0, %v82_v6  ;;  %v239_v8 = vld [vmem:[#allocation3] sm:$0xff]  ;;  %v240_v9 = vld [vmem:[#allocation3 + $0x8] sm:$0xff]  ;;  %v241_v10 = vld [vmem:[#allocation3 + $0x10] sm:$0xff]  ;;  %v1156_v3 = vmov 0.0|0.0   ;;  %vm460_vm5 = vcmask 1044484   ;;  %vm462_vm6 = vcmask 1045509  }
  0x3c   :  { %959 = vmatprep.subr.bf16.mxu0 %v958_v4  ;;  %v966_v11 = vpack.c.bf16 %v240_v9, %v239_v8  ;;  %v242_v12 = vld [vmem:[#allocation3 + $0x18] sm:$0xff]  ;;  %v243_v14 = vld [vmem:[#allocation3 + $0x20] sm:$0xff]  ;;  %v244_v15 = vld [vmem:[#allocation3 + $0x28] sm:$0xff]  ;;  %vm464_vm7 = vcmask 1046534   ;;  %vm466_vm8 = vcmask 1047559   ;;  %s1160_s5 = smov [#allocation9]  }
  0x3d   :  { %961 = vmatpush3.bf16.msra.mxu0 %v958_v4  ;;  %v970_v13 = vpack.c.bf16 %v242_v12, %v241_v10  ;;  %v83_v16 = vld [vmem:[%s1371_s0 + $0x8] sm:$0xff]  ;;  %v84_v17 = vld [vmem:[%s1371_s0 + $0x10] sm:$0xff]  ;;  %v974_v18 = vpack.c.bf16 %v244_v15, %v243_v14  ;;  %v246_v20 = vld [vmem:[#allocation3 + $0x38] sm:$0xff]  ;;  %s725_s7 = sshll.u32 %s1160_s5, 4  ;;  %vm717_vm9 = vcmask 57344   ;;  %s726_s7 = int_to_ptr.vmem [resolvable:$true] %s725_s7 }
  0x3e   :  { %963 = vmatprep.subr.bf16.mxu0 %v962_v7  ;;  %967 = vmatprep.subr.bf16.mxu1 %v966_v11  ;;  %v245_v19 = vld [vmem:[#allocation3 + $0x30] sm:$0xff]  ;;  %v86_v22 = vld [vmem:[%s1371_s0 + $0x20] sm:$0xff]  ;;  %v248_v25 = vld [vmem:[#allocation3 + $0x48] sm:$0xff]  ;;  %s1127_s30 = scalar_lea.vmem %s726_s7, 32  ;;  %p1128_p11 = scmp.lt.s32.totalorder %s726_s7, %s726_s7 }
  0x3f   :  { %969 = vmatpush3.bf16.msra.mxu1 %v966_v11  ;;  %v85_v21 = vld [vmem:[%s1371_s0 + $0x18] sm:$0xff]  ;;  %v978_v23 = vpack.c.bf16 %v246_v20, %v245_v19  ;;  %v247_v24 = vld [vmem:[#allocation3 + $0x40] sm:$0xff]  ;;  %v88_v27 = vld [vmem:[%s1371_s0 + $0x30] sm:$0xff] }
  0x40   :  { %971 = vmatprep.subr.bf16.mxu1 %v970_v13  ;;  %v87_v26 = vld [vmem:[%s1371_s0 + $0x28] sm:$0xff]  ;;  %v982_v28 = vpack.c.bf16 %v248_v25, %v247_v24  ;;  %v249_v29 = vld [vmem:[#allocation3 + $0x50] sm:$0xff]  ;;  %v250_v30 = vld [vmem:[#allocation3 + $0x58] sm:$0xff]  ;;  %v1158_v25 = vmov 0.0  }
  0x41   :  { %965 = vmatpush3.bf16.msra.mxu0 %v962_v7  ;;  %v89_v31 = vld [vmem:[%s1371_s0 + $0x38] sm:$0xff]  ;;  %v986_v32 = vpack.c.bf16 %v250_v30, %v249_v29  ;;  %v251_v33 = vld [vmem:[#allocation3 + $0x60] sm:$0xff]  ;;  %v252_v34 = vld [vmem:[#allocation3 + $0x68] sm:$0xff] }
  0x42   :  { %v990_v35 = vpack.c.bf16 %v252_v34, %v251_v33  ;;  %v253_v36 = vld [vmem:[#allocation3 + $0x70] sm:$0xff]  ;;  %v254_v37 = vld [vmem:[#allocation3 + $0x78] sm:$0xff]  ;;  %v423_v0 = vld [vmem:[#allocation6] sm:$0xff]  ;;  %998 = vmatprep.subr.bf16.mxu0 %v1156_v3 }
  0x43   :  { %973 = vmatpush3.bf16.msra.mxu1 %v970_v13  ;;  %v994_v38 = vpack.c.bf16 %v254_v37, %v253_v36  ;;  %v735_v39 = vld [vmem:[%s1373_s2] ss:$0 sm:$0xff]  ;;  %v424_v1 = vld [vmem:[#allocation6 + $0x8] sm:$0xff]  ;;  %v425_v4 = vld [vmem:[#allocation6 + $0x10] sm:$0xff] }
  0x44   :  { %828 = vmatmul.mubr.msk.f32.vlgmr.msra.gmra.mrb[0].mxu0 %vm101_vm0, %v83_v16  ;;  %975 = vmatprep.subr.bf16.mxu1 %v974_v18  ;;  %v999_v2 = vpack.c.bf16 %v424_v1, %v423_v0  ;;  %v426_v5 = vld [vmem:[#allocation6 + $0x18] sm:$0xff]  ;;  %v427_v7 = vld [vmem:[#allocation6 + $0x20] sm:$0xff]  ;;  %v428_v8 = vld [vmem:[#allocation6 + $0x28] sm:$0xff] }
  0x45   :  { %830 = vmatprep.mubr.msk.f32.mxu0 %vm101_vm0, %v84_v17  ;;  %v1002_v6 = vpack.c.bf16 %v426_v5, %v425_v4  ;;  %v1005_v9 = vpack.c.bf16 %v428_v8, %v427_v7  ;;  %v429_v10 = vld [vmem:[#allocation6 + $0x30] sm:$0xff]  ;;  %v430_v11 = vld [vmem:[#allocation6 + $0x38] sm:$0xff]  ;;  %v431_v13 = vld [vmem:[#allocation6 + $0x40] sm:$0xff] }
  0x46   :  { %1000 = vmatpush3.bf16.msra.mxu0 %v999_v2  ;;  %v1008_v12 = vpack.c.bf16 %v430_v11, %v429_v10  ;;  %v432_v14 = vld [vmem:[#allocation6 + $0x48] sm:$0xff]  ;;  %v433_v16 = vld [vmem:[#allocation6 + $0x50] sm:$0xff]  ;;  %v434_v17 = vld [vmem:[#allocation6 + $0x58] sm:$0xff] }
  0x47   :  { %977 = vmatpush3.bf16.msra.mxu1 %v974_v18  ;;  %1001 = vmatprep.subr.bf16.mxu0 %v1156_v3  ;;  %v1011_v15 = vpack.c.bf16 %v432_v14, %v431_v13  ;;  %v1014_v18 = vpack.c.bf16 %v434_v17, %v433_v16  ;;  %v435_v19 = vld [vmem:[#allocation6 + $0x60] sm:$0xff]  ;;  %v436_v20 = vld [vmem:[#allocation6 + $0x68] sm:$0xff]  ;;  %v544_v30 = vld [vmem:[#allocation8 + $0x18] sm:$0xff] }
  0x48   :  { %831 = vmatmul.mubr.msk.f32.gmra.mrb[2].mxu0 %vm101_vm0, %v85_v21  ;;  %979 = vmatprep.subr.bf16.mxu1 %v978_v23  ;;  %v1017_v21 = vpack.c.bf16 %v436_v20, %v435_v19  ;;  %v546_v33 = vld [vmem:[#allocation8 + $0x28] sm:$0xff]  ;;  %v548_v36 = vld [vmem:[#allocation8 + $0x38] sm:$0xff] }
  0x49   :  { %833 = vmatprep.mubr.msk.f32.mxu0 %vm101_vm0, %v86_v22  ;;  %v437_v22 = vld [vmem:[#allocation6 + $0x70] sm:$0xff] }
  0x4a   :  { %1003 = vmatpush3.bf16.msra.mxu0 %v1002_v6 }
  0x4b   :  { %981 = vmatpush3.bf16.msra.mxu1 %v978_v23  ;;  %1004 = vmatprep.subr.bf16.mxu0 %v1156_v3  ;;  %v438_v23 = vld [vmem:[#allocation6 + $0x78] sm:$0xff] }
  0x4c   :  { %834 = vmatmul.mubr.msk.f32.gmra.mrb[4].mxu0 %vm101_vm0, %v87_v26  ;;  %983 = vmatprep.subr.bf16.mxu1 %v982_v28  ;;  %v1020_v24 = vpack.c.bf16 %v438_v23, %v437_v22  ;;  %v541_v26 = vld [vmem:[#allocation8] sm:$0xff] }
  0x4d   :  { %836 = vmatprep.mubr.msk.f32.mxu0 %vm101_vm0, %v88_v27  ;;  %v542_v27 = vld [vmem:[#allocation8 + $0x8] sm:$0xff] }
  0x4e   :  { %1006 = vmatpush3.bf16.msra.mxu0 %v1005_v9  ;;  %v1023_v29 = vpack.c.bf16 %v542_v27, %v541_v26 }
  0x4f   :  { %985 = vmatpush3.bf16.msra.mxu1 %v982_v28  ;;  %1007 = vmatprep.subr.bf16.mxu0 %v1156_v3  ;;  %v543_v28 = vld [vmem:[#allocation8 + $0x10] sm:$0xff] }
  0x50   :  { %837 = vmatmul.mubr.msk.f32.gmra.mrb[6].mxu0 %vm101_vm0, %v89_v31  ;;  %987 = vmatprep.subr.bf16.mxu1 %v986_v32  ;;  %v1026_v31 = vpack.c.bf16 %v544_v30, %v543_v28 }
  0x51   :  { %915 = vmatprep.mubr.msk.f32.mxu0 %vm1157_vm1, %v1158_v25 }
  0x52   :  { %1009 = vmatpush3.bf16.msra.mxu0 %v1008_v12 }
  0x53   :  { %989 = vmatpush3.bf16.msra.mxu1 %v986_v32  ;;  %1010 = vmatprep.subr.bf16.mxu0 %v1156_v3  ;;  %v545_v32 = vld [vmem:[#allocation8 + $0x20] sm:$0xff] }
  0x54   :  { %991 = vmatprep.subr.bf16.mxu1 %v990_v35  ;;  %v1029_v34 = vpack.c.bf16 %v546_v33, %v545_v32 }
  0x56   :  { %1012 = vmatpush3.bf16.msra.mxu0 %v1011_v15 }
  0x57   :  { %993 = vmatpush3.bf16.msra.mxu1 %v990_v35  ;;  %1013 = vmatprep.subr.bf16.mxu0 %v1156_v3  ;;  %v547_v35 = vld [vmem:[#allocation8 + $0x30] sm:$0xff] }
  0x58   :  { %995 = vmatprep.subr.bf16.mxu1 %v994_v38  ;;  %v1032_v37 = vpack.c.bf16 %v548_v36, %v547_v35 }
  0x5a   :  { %1015 = vmatpush3.bf16.msra.mxu0 %v1014_v18 }
  0x5b   :  { %997 = vmatpush3.bf16.msra.mxu1 %v994_v38  ;;  %1016 = vmatprep.subr.bf16.mxu0 %v1156_v3  ;;  %v549_v38 = vld [vmem:[#allocation8 + $0x40] sm:$0xff] }
  0x5c   :  { %1022 = vmatprep.subr.bf16.mxu1 %v1156_v3 }
  0x5e   :  { %1018 = vmatpush3.bf16.msra.mxu0 %v1017_v21 }
  0x5f   :  { %1019 = vmatprep.subr.bf16.mxu0 %v1156_v3 }
  0x62   :  { %1021 = vmatpush3.bf16.msra.mxu0 %v1020_v24 }
  0x63   :  { %953 = vmatprep.subr.mxu0 %v1158_v25 }
 0x117   :  { %v829_v40 = vpop.f32.mrb[0].mxu0 }
 0x118   :  { %v198_v41 = vadd.f32 %v829_v40, %v735_v39  ;;  %v192_v42 = vpop.f32.mrb[1].mxu0 }
 0x119   :  { %v193_v43 = vadd.f32 %v735_v39, %v192_v42  ;;  %v552_v42 = vld [vmem:[#allocation8 + $0x58] sm:$0xff] }
 0x11a   :  { %v232_v46 = vmax.f32 %v198_v41, 0.0  ;;  %v551_v41 = vld [vmem:[#allocation8 + $0x50] sm:$0xff] }
 0x11b   :  { %v832_v44 = vpop.f32.mrb[2].mxu0  ;;  %v231_v45 = vmax.f32 %v193_v43, 0.0  ;;  %v1038_v43 = vpack.c.bf16 %v552_v42, %v551_v41 }
 0x11c   :  { %v208_v47 = vadd.f32 %v832_v44, %v735_v39  ;;  %v202_v48 = vpop.f32.mrb[3].mxu0  ;;  %v744_v44 = vld [vmem:[%s1375_s4] ss:$0 sm:$0xff] }
 0x11d   :  { %v203_v49 = vadd.f32 %v735_v39, %v202_v48  ;;  %871 = vmatprep.mubr.f32.mxu1 %v231_v45 }
 0x11e   :  { %872 = vmatmul.mubr.f32.vlgmr.msra.gmra.mrb[0].mxu1 %v232_v46  ;;  %v234_v52 = vmax.f32 %v208_v47, 0.0 }
 0x11f   :  { %v233_v50 = vmax.f32 %v203_v49, 0.0  ;;  %v835_v51 = vpop.f32.mrb[4].mxu0  ;;  %1024 = vmatpush3.bf16.msra.mxu1 %v1023_v29 }
 0x120   :  { %v218_v53 = vadd.f32 %v835_v51, %v735_v39  ;;  %v212_v54 = vpop.f32.mrb[5].mxu0  ;;  %1025 = vmatprep.subr.bf16.mxu1 %v1156_v3 }
 0x121   :  { %v213_v55 = vadd.f32 %v735_v39, %v212_v54  ;;  %874 = vmatprep.mubr.f32.mxu1 %v233_v50 }
 0x122   :  { %875 = vmatmul.mubr.f32.gmra.mrb[2].mxu1 %v234_v52  ;;  %v236_v58 = vmax.f32 %v218_v53, 0.0 }
 0x123   :  { %v235_v56 = vmax.f32 %v213_v55, 0.0  ;;  %v838_v57 = vpop.f32.mrb[6].mxu0  ;;  %1027 = vmatpush3.bf16.msra.mxu1 %v1026_v31 }
 0x124   :  { %v228_v59 = vadd.f32 %v838_v57, %v735_v39  ;;  %v222_v60 = vpop.f32.mrb[7].mxu0  ;;  %1028 = vmatprep.subr.bf16.mxu1 %v1156_v3 }
 0x125   :  { %v223_v61 = vadd.f32 %v735_v39, %v222_v60  ;;  %877 = vmatprep.mubr.f32.mxu1 %v235_v56  ;;  %v550_v39 = vld [vmem:[#allocation8 + $0x48] sm:$0xff] }
 0x126   :  { %878 = vmatmul.mubr.f32.gmra.mrb[4].mxu1 %v236_v58  ;;  %v238_v63 = vmax.f32 %v228_v59, 0.0  ;;  %v1035_v40 = vpack.c.bf16 %v550_v39, %v549_v38 }
 0x127   :  { %v237_v62 = vmax.f32 %v223_v61, 0.0  ;;  %1030 = vmatpush3.bf16.msra.mxu1 %v1029_v34 }
 0x128   :  { %1031 = vmatprep.subr.bf16.mxu1 %v1156_v3 }
 0x129   :  { %880 = vmatprep.mubr.f32.mxu1 %v237_v62 }
 0x12a   :  { %881 = vmatmul.mubr.f32.gmra.mrb[6].mxu1 %v238_v63 }
 0x12b   :  { %950 = vmatprep.mubr.msk.f32.mxu1 %vm1157_vm1, %v1158_v25  ;;  %1033 = vmatpush3.bf16.msra.mxu1 %v1032_v37 }
 0x12c   :  { %1034 = vmatprep.subr.bf16.mxu1 %v1156_v3 }
 0x12f   :  { %1036 = vmatpush3.bf16.msra.mxu1 %v1035_v40 }
 0x130   :  { %1037 = vmatprep.subr.bf16.mxu1 %v1156_v3 }
 0x133   :  { %1039 = vmatpush3.bf16.msra.mxu1 %v1038_v43 }
 0x134   :  { %1040 = vmatprep.subr.bf16.mxu1 %v1156_v3 }
 0x1f1   :  { %v873_v45 = vpop.f32.mrb[0].mxu1 }
 0x1f2   :  { %v334_v46 = vadd.f32 %v873_v45, %v744_v44  ;;  %v328_v47 = vpop.f32.mrb[1].mxu1 }
 0x1f3   :  { %v329_v48 = vadd.f32 %v744_v44, %v328_v47 }
 0x1f4   :  { %v368_v49 = vmax.f32 %v334_v46, 0.0 }
 0x1f5   :  { %v367_v50 = vmax.f32 %v329_v48, 0.0  ;;  %v876_v51 = vpop.f32.mrb[2].mxu1 }
 0x1f6   :  { %v381_v52 = vrot.slane %v368_v49, 4  ;;  %v344_v53 = vadd.f32 %v876_v51, %v744_v44  ;;  %v338_v54 = vpop.f32.mrb[3].mxu1 }
 0x1f7   :  { %v375_v55 = vrot.slane %v367_v50, 4  ;;  %v339_v56 = vadd.f32 %v744_v44, %v338_v54 }
 0x1f8   :  { %v382_v57 = vadd.f32 %v381_v52, %v368_v49  ;;  %v370_v58 = vmax.f32 %v344_v53, 0.0 }
 0x1f9   :  { %v376_v59 = vadd.f32 %v375_v55, %v367_v50  ;;  %v369_v60 = vmax.f32 %v339_v56, 0.0  ;;  %v879_v61 = vpop.f32.mrb[4].mxu1 }
 0x1fa   :  { %v383_v62 = vrot.slane %v382_v57, 2  ;;  %v393_v63 = vrot.slane %v370_v58, 4  ;;  %v354_v0 = vadd.f32 %v879_v61, %v744_v44  ;;  %v348_v1 = vpop.f32.mrb[5].mxu1 }
 0x1fb   :  { %v377_v2 = vrot.slane %v376_v59, 2  ;;  %v387_v4 = vrot.slane %v369_v60, 4  ;;  %v349_v5 = vadd.f32 %v744_v44, %v348_v1  ;;  %v555_v1 = vld [vmem:[#allocation8 + $0x70] sm:$0xff] }
 0x1fc   :  { %v384_v6 = vadd.f32 %v383_v62, %v382_v57  ;;  %v394_v7 = vadd.f32 %v393_v63, %v370_v58  ;;  %v372_v8 = vmax.f32 %v354_v0, 0.0  ;;  %v553_v62 = vld [vmem:[#allocation8 + $0x60] sm:$0xff]  ;;  %v554_v63 = vld [vmem:[#allocation8 + $0x68] sm:$0xff] }
 0x1fd   :  { %v378_v9 = vadd.f32 %v377_v2, %v376_v59  ;;  %v388_v10 = vadd.f32 %v387_v4, %v369_v60  ;;  %v371_v11 = vmax.f32 %v349_v5, 0.0  ;;  %v882_v12 = vpop.f32.mrb[6].mxu1  ;;  %v1041_v0 = vpack.c.bf16 %v554_v63, %v553_v62  ;;  %v556_v2 = vld [vmem:[#allocation8 + $0x78] sm:$0xff] }
 0x1fe   :  { %v385_v13 = vrot.slane %v384_v6, 1  ;;  %v395_v14 = vrot.slane %v394_v7, 2  ;;  %v405_v15 = vrot.slane %v372_v8, 4  ;;  %v364_v16 = vadd.f32 %v882_v12, %v744_v44  ;;  %v358_v17 = vpop.f32.mrb[7].mxu1  ;;  %v745_v5 = vld [vmem:[%s1377_s6] ss:$0 sm:$0xff] }
 0x1ff   :  { %v379_v18 = vrot.slane %v378_v9, 1  ;;  %v389_v19 = vrot.slane %v388_v10, 2  ;;  %v399_v20 = vrot.slane %v371_v11, 4  ;;  %v359_v21 = vadd.f32 %v744_v44, %v358_v17  ;;  %1042 = vmatpush3.bf16.msra.mxu1 %v1041_v0  ;;  %v636_v17 = vld [vmem:[%s1380_s9] sm:$0x1] }
 0x200   :  { %v386_v22 = vadd.f32 %v385_v13, %v384_v6  ;;  %v396_v23 = vadd.f32 %v395_v14, %v394_v7  ;;  %v406_v24 = vadd.f32 %v405_v15, %v372_v8  ;;  %v374_v26 = vmax.f32 %v364_v16, 0.0  ;;  %1043 = vmatprep.subr.bf16.mxu1 %v1156_v3  ;;  %v746_v3 = vld [vmem:[%s1379_s8] ss:$0 sm:$0xff]  ;;  %s1123_s8 = scalar_lea.vmem %s726_s7, 16 }
 0x201   :  { %v380_v27 = vadd.f32 %v379_v18, %v378_v9  ;;  %v390_v28 = vadd.f32 %v389_v19, %v388_v10  ;;  %v400_v29 = vadd.f32 %v399_v20, %v371_v11  ;;  %v373_v30 = vmax.f32 %v359_v21, 0.0  ;;  %p1124_p10 = scmp.ne.s32.totalorder %s726_s7, %s1123_s8  ;;  %p1129_p12 = scmp.lt.s32.totalorder %s1127_s30, %s1123_s8 }
 0x202   :  { %v397_v31 = vrot.slane %v396_v23, 1  ;;  %v407_v32 = vrot.slane %v406_v24, 2  ;;  %v417_v33 = vrot.slane %v374_v26, 4  ;;  %v1044_v4 = vpack.c.bf16 %v556_v2, %v555_v1 }
 0x203   :  { %v455_v34 = vsel %vm454_vm2, %v386_v22, %v380_v27  ;;  %v391_v35 = vrot.slane %v390_v28, 1  ;;  %v401_v36 = vrot.slane %v400_v29, 2  ;;  %v411_v37 = vrot.slane %v373_v30, 4  ;;  %p1130_p13 = por %p1129_p12, %p1128_p11 }
 0x204   :  { %v408_v38 = vadd.f32 %v407_v32, %v406_v24  ;;  %v418_v39 = vadd.f32 %v417_v33, %v374_v26  ;;  %v398_v43 = vadd.f32 %v397_v31, %v396_v23  ;;  %1045 = vmatpush3.bf16.msra.mxu1 %v1044_v4  ;;  %v1159_v11 = vmov 0  }
 0x205   :  { %v392_v40 = vadd.f32 %v391_v35, %v390_v28  ;;  %v402_v41 = vadd.f32 %v401_v36, %v400_v29  ;;  %v412_v42 = vadd.f32 %v411_v37, %v373_v30  ;;  %1056 = vset.pattern.permute.xlu0 %v1159_v11  ;;  %v643_v18 = vlaneseq  ;;  %p1131_p0 = pnand %p1130_p13, %p1124_p10 }
 0x206   :  { %v409_v44 = vrot.slane %v408_v38, 1  ;;  %v419_v45 = vrot.slane %v418_v39, 2 }
 0x207   :  { %v457_v46 = vsel %vm456_vm3, %v392_v40, %v455_v34  ;;  %v403_v47 = vrot.slane %v402_v41, 1  ;;  %v413_v48 = vrot.slane %v412_v42, 2  ;;  %v644_v19 = vshrl.u32 %v643_v18, 7 }
 0x208   :  { %v459_v49 = vsel %vm458_vm4, %v398_v43, %v457_v46  ;;  %v420_v50 = vadd.f32 %v419_v45, %v418_v39  ;;  %v410_v53 = vadd.f32 %v409_v44, %v408_v38 }
 0x209   :  { %v404_v51 = vadd.f32 %v403_v47, %v402_v41  ;;  %v414_v52 = vadd.f32 %v413_v48, %v412_v42  ;;  %v645_v20 = vsub.s32 0, %v644_v19 }
 0x20a   :  { %v421_v54 = vrot.slane %v420_v50, 1 }
 0x20b   :  { %v461_v55 = vsel %vm460_vm5, %v404_v51, %v459_v49  ;;  %v415_v56 = vrot.slane %v414_v52, 1 }
 0x20c   :  { %v463_v57 = vsel %vm462_vm6, %v410_v53, %v461_v55  ;;  %v422_v59 = vadd.f32 %v421_v54, %v420_v50 }
 0x20d   :  { %v416_v58 = vadd.f32 %v415_v56, %v414_v52 }
 0x20f   :  { %v465_v60 = vsel %vm464_vm7, %v416_v58, %v463_v57 }
 0x210   :  { %v467_v61 = vsel %vm466_vm8, %v422_v59, %v465_v60 }
 0x211   :  { %916 = vmatmul.mubr.f32.vlgmr.msra.gmra.mrb[8].mxu0 %v467_v61 }
 0x212   :  { %955 = vmatprep.mubr.msk.f32.mxu0 %vm1157_vm1, %v1158_v25  ;;  %v637_v25 = vld [vmem:[#allocation2] sm:$0x1] }
 0x213   :  { %640 = vperm.xlu0 %1056, %v637_v25  }
 0x292   :  { %v641_v21 = vpop.permute.xlu0 %640 }
 0x293   :  { %v646_v22 = vrot.slane %v641_v21, %v645_v20 }
 0x2e4   :  { %v535_v6 = vpop.f32.mrb[8].mxu0 }
 0x2e5   :  { %v536_v7 = vadd.f32 %v745_v5, %v535_v6  ;;  %v917_v8 = vpop.f32.mrb[9].mxu0 }
 0x2e7   :  { %v539_v9 = vmax.f32 %v536_v7, 0.0 }
 0x2e9   :  { %v540_v10 = vadd.f32 %v539_v9, %v467_v61 }
 0x2eb   :  { %951 = vmatmul.mubr.f32.vlgmr.msra.gmra.mrb[8].mxu1 %v540_v10 }
 0x3be   :  { %v630_v12 = vpop.f32.mrb[8].mxu1 }
 0x3bf   :  { %v631_v13 = vadd.f32 %v746_v3, %v630_v12  ;;  %v952_v14 = vpop.f32.mrb[9].mxu1 }
 0x3c1   :  { %v634_v15 = vmax.f32 %v631_v13, 0.0 }
 0x3c3   :  { %v635_v16 = vadd.f32 %v634_v15, %v540_v10 }
 0x3c5   :  { %954 = vmatpush3.xpose.msra.mxu0 %v635_v16 }
 0x3c8   :  { %956 = vmatmul.mubr.f32.vlgmr.msra.gmra.mrb[10].mxu0 %v636_v17 }
 0x49b   :  { %v713_v23 = vpop.f32.mrb[10].mxu0 }
 0x49c   :  { %v714_v24 = vadd.f32 %v713_v23, %v646_v22  ;;  %v957_v26 = vpop.f32.mrb[11].mxu0 }
 0x49e   :  { %718 = vst.msk [vmem:[#allocation9] sm:$0x1] %vm717_vm9, %v714_v24 }
 0x49f   :  { %1134 = shalt.err (!%p1131_p0)
}
 0x4a0   :  { %s1135_s1 = scalar_lea.hbm %s1382_s11, 16 }
 0x4a1   :  { %p1136_p1 = scmp.ne.s32.totalorder %s1382_s11, %s1135_s1  ;;  %p1139_p2 = scmp.lt.u32.totalorder %s1135_s1, %s1382_s11 }
 0x4a3   :  { %p1141_p3 = pnand %p1139_p2, %p1136_p1 }
 0x4a5   :  { %1144 = shalt.err (!%p1141_p3)
}
 0x4a6   :  { %728 = dma.vmem_to_hbm [thread:$0]  %s726_s7, 16, %s1382_s11, [#allocation5]  }
 0x4a7   :  { %1149 = dma.done.wait [#allocation5], 16  }
 0x4a8   :  { %1150 = vsyncadd [#allocation5], 4294967280 }
 0x4a9   :  { %732 = vsyncpa [#allocation4], 1 }
 0x4aa   :  { %733 = vsyncpa [#allocation7], 1 }
 0x4ab   :  { %734 = vsyncpa [#allocation5], 1 }

// kernel: tpu_custom_call.1
= control target key start
LH: loop header
LB: loop body
LE: loop exit
PB: predicated region body
PF: predicated region fallthrough
CT: control target
= control target key end

     0   :  { %s1371_s0 = inlined_call_operand.vmem [shape: f32[64,32], index: 0, kind: input, shape index: {}]   ;;  %s1372_s1 = inlined_call_operand.vmem [shape: f32[32,128], index: 1, kind: input, shape index: {}]   ;;  %s1373_s2 = inlined_call_operand.vmem [shape: f32[1,128], index: 2, kind: input, shape index: {}]   ;;  %s1374_s3 = inlined_call_operand.hbm [shape: f32[128,128], index: 3, kind: input, shape index: {}]   ;;  %s1375_s4 = inlined_call_operand.vmem [shape: f32[1,128], index: 4, kind: input, shape index: {}]   ;;  %s1376_s5 = inlined_call_operand.hbm [shape: f32[128,128], index: 5, kind: input, shape index: {}]   ;;  %s1377_s6 = inlined_call_operand.vmem [shape: f32[1,128], index: 6, kind: input, shape index: {}]   ;;  %s1378_s7 = inlined_call_operand.hbm [shape: f32[128,128], index: 7, kind: input, shape index: {}]   ;;  %s1379_s8 = inlined_call_operand.vmem [shape: f32[1,128], index: 8, kind: input, shape index: {}]   ;;  %s1380_s9 = inlined_call_operand.vmem [shape: f32[1,128], index: 9, kind: input, shape index: {}]   ;;  %s1381_s10 = inlined_call_operand.<no memory space> [shape: f32[1,1], index: 10, kind: input, shape index: {}]   ;;  %s1382_s11 = inlined_call_operand.hbm [shape: f32[1,8], index: 11, kind: output, shape index: {}]  }
   0x1   :  { %v16_v0 = vstv %s1381_s10 }
   0x2   :  { %17 = vst [vmem:[#allocation2] sm:$0x1] %v16_v0 }
   0x3   :  { %18 = vsyncpa [#allocation4], 0 }
   0x4   :  { %19 = vsyncpa [#allocation7], 0 }
   0x5   :  { %20 = vsyncpa [#allocation5], 0  ;;  %s1151_s19 = smov [#allocation6]   ;;  %s1152_s21 = smov [#allocation3]  }
   0x6   :  { %s46_s20 = sshll.u32 %s1151_s19, 4  ;;  %s32_s22 = sshll.u32 %s1152_s21, 4  ;;  %s47_s20 = int_to_ptr.vmem [resolvable:$true] %s46_s20  ;;  %s1224_s22 = int_to_ptr.vmem [resolvable:$true] %s32_s22 }
   0x7   :  { %s1057_s25 = scalar_lea.hbm %s1376_s5, 2048 }
   0x8   :  { %p1058_p0 = scmp.ne.s32.totalorder %s1376_s5, %s1057_s25  ;;  %p1061_p1 = scmp.lt.u32.totalorder %s1057_s25, %s1376_s5 }
   0xa   :  { %p1063_p2 = pnand %p1061_p1, %p1058_p0 }
   0xc   :  { %1066 = shalt.err (!%p1063_p2)
}
   0xd   :  { %s1067_s29 = scalar_lea.vmem %s47_s20, 2048  ;;  %p1072_p4 = scmp.lt.s32.totalorder %s47_s20, %s47_s20 }
   0xe   :  { %p1068_p3 = scmp.ne.s32.totalorder %s47_s20, %s1067_s29  ;;  %p1073_p5 = scmp.lt.s32.totalorder %s1067_s29, %s1067_s29 }
  0x10   :  { %p1074_p6 = por %p1073_p5, %p1072_p4 }
  0x12   :  { %p1075_p7 = pnand %p1074_p6, %p1068_p3 }
  0x14   :  { %1078 = shalt.err (!%p1075_p7)
}
  0x15   :  { %s1153_s30 = smov 128   ;;  %s1154_s12 = smov 8  }
  0x16   :  { %52 = dma.hbm_to_vmem [thread:$0]  %s1376_s5, 2048, %s47_s20, [#allocation7], %s1153_s30, %s1153_s30, %s1154_s12  }
  0x17   :  { %s1079_s17 = scalar_lea.hbm %s1374_s3, 2048 }
  0x18   :  { %p1080_p8 = scmp.ne.s32.totalorder %s1374_s3, %s1079_s17  ;;  %p1083_p9 = scmp.lt.u32.totalorder %s1079_s17, %s1374_s3 }
  0x1a   :  { %p1085_p10 = pnand %p1083_p9, %p1080_p8 }
  0x1c   :  { %1088 = shalt.err (!%p1085_p10)
}
  0x1d   :  { %s1089_s24 = scalar_lea.vmem %s1224_s22, 2048  ;;  %p1094_p12 = scmp.lt.s32.totalorder %s1224_s22, %s1224_s22 }
  0x1e   :  { %p1090_p11 = scmp.ne.s32.totalorder %s1224_s22, %s1089_s24  ;;  %p1095_p13 = scmp.lt.s32.totalorder %s1089_s24, %s1089_s24 }
  0x20   :  { %p1096_p0 = por %p1095_p13, %p1094_p12 }
  0x22   :  { %p1097_p1 = pnand %p1096_p0, %p1090_p11 }
  0x24   :  { %1100 = shalt.err (!%p1097_p1)
}
  0x25   :  { %38 = dma.hbm_to_vmem [thread:$0]  %s1374_s3, 2048, %s1224_s22, [#allocation4], %s1153_s30, %s1153_s30, %s1154_s12  }
  0x26   :  { %s1155_s25 = smov [#allocation8]   ;;  %s1101_s28 = scalar_lea.hbm %s1378_s7, 2048 }
  0x27   :  { %s60_s26 = sshll.u32 %s1155_s25, 4  ;;  %p1102_p2 = scmp.ne.s32.totalorder %s1378_s7, %s1101_s28  ;;  %s61_s26 = int_to_ptr.vmem [resolvable:$true] %s60_s26 }
  0x28   :  { %p1105_p3 = scmp.lt.u32.totalorder %s1101_s28, %s1378_s7 }
  0x2a   :  { %p1107_p4 = pnand %p1105_p3, %p1102_p2 }
  0x2c   :  { %1110 = shalt.err (!%p1107_p4)
}
  0x2d   :  { %s1111_s16 = scalar_lea.vmem %s61_s26, 2048  ;;  %p1116_p6 = scmp.lt.s32.totalorder %s61_s26, %s61_s26 }
  0x2e   :  { %p1112_p5 = scmp.ne.s32.totalorder %s61_s26, %s1111_s16  ;;  %p1117_p7 = scmp.lt.s32.totalorder %s1111_s16, %s1111_s16 }
  0x30   :  { %p1118_p8 = por %p1117_p7, %p1116_p6 }
  0x32   :  { %p1119_p9 = pnand %p1118_p8, %p1112_p5 }
  0x34   :  { %1122 = shalt.err (!%p1119_p9)
}
  0x35   :  { %66 = dma.hbm_to_vmem [thread:$0]  %s1378_s7, 2048, %s61_s26, [#allocation7], %s1153_s30, %s1153_s30, %s1154_s12  }
  0x36   :  { %1145 = dma.done.wait [#allocation4], 2048  }
  0x37   :  { %1146 = vsyncadd [#allocation4], 4294965248 }
  0x38   :  { %1147 = dma.done.wait [#allocation7], 4096  }
  0x39   :  { %1148 = vsyncadd [#allocation7], 4294963200  ;;  %vm101_vm0 = vcmask 261120   ;;  %v90_v1 = vld [vmem:[%s1372_s1] sm:$0xff]  ;;  %v91_v2 = vld [vmem:[%s1372_s1 + $0x8] sm:$0xff]  ;;  %vm1157_vm1 = vmmov 0  }
  0x3a   :  { %v92_v3 = vld [vmem:[%s1372_s1 + $0x10] sm:$0xff]  ;;  %v958_v4 = vpack.c.bf16 %v91_v2, %v90_v1  ;;  %v93_v5 = vld [vmem:[%s1372_s1 + $0x18] sm:$0xff]  ;;  %v82_v6 = vld [vmem:[%s1371_s0] sm:$0xff]  ;;  %vm454_vm2 = vcmask 1041409   ;;  %vm456_vm3 = vcmask 1042434   ;;  %vm458_vm4 = vcmask 1043459  }
  0x3b   :  { %v962_v7 = vpack.c.bf16 %v93_v5, %v92_v3  ;;  %827 = vmatprep.mubr.msk.f32.mxu0 %vm101_vm0, %v82_v6  ;;  %v239_v8 = vld [vmem:[#allocation3] sm:$0xff]  ;;  %v240_v9 = vld [vmem:[#allocation3 + $0x8] sm:$0xff]  ;;  %v241_v10 = vld [vmem:[#allocation3 + $0x10] sm:$0xff]  ;;  %v1156_v3 = vmov 0.0|0.0   ;;  %vm460_vm5 = vcmask 1044484   ;;  %vm462_vm6 = vcmask 1045509  }
  0x3c   :  { %959 = vmatprep.subr.bf16.mxu0 %v958_v4  ;;  %v966_v11 = vpack.c.bf16 %v240_v9, %v239_v8  ;;  %v242_v12 = vld [vmem:[#allocation3 + $0x18] sm:$0xff]  ;;  %v243_v14 = vld [vmem:[#allocation3 + $0x20] sm:$0xff]  ;;  %v244_v15 = vld [vmem:[#allocation3 + $0x28] sm:$0xff]  ;;  %vm464_vm7 = vcmask 1046534   ;;  %vm466_vm8 = vcmask 1047559   ;;  %s1160_s5 = smov [#allocation9]  }
  0x3d   :  { %961 = vmatpush3.bf16.msra.mxu0 %v958_v4  ;;  %v970_v13 = vpack.c.bf16 %v242_v12, %v241_v10  ;;  %v83_v16 = vld [vmem:[%s1371_s0 + $0x8] sm:$0xff]  ;;  %v84_v17 = vld [vmem:[%s1371_s0 + $0x10] sm:$0xff]  ;;  %v974_v18 = vpack.c.bf16 %v244_v15, %v243_v14  ;;  %v246_v20 = vld [vmem:[#allocation3 + $0x38] sm:$0xff]  ;;  %s725_s7 = sshll.u32 %s1160_s5, 4  ;;  %vm717_vm9 = vcmask 57344   ;;  %s726_s7 = int_to_ptr.vmem [resolvable:$true] %s725_s7 }
  0x3e   :  { %963 = vmatprep.subr.bf16.mxu0 %v962_v7  ;;  %967 = vmatprep.subr.bf16.mxu1 %v966_v11  ;;  %v245_v19 = vld [vmem:[#allocation3 + $0x30] sm:$0xff]  ;;  %v86_v22 = vld [vmem:[%s1371_s0 + $0x20] sm:$0xff]  ;;  %v248_v25 = vld [vmem:[#allocation3 + $0x48] sm:$0xff]  ;;  %s1127_s30 = scalar_lea.vmem %s726_s7, 32  ;;  %p1128_p11 = scmp.lt.s32.totalorder %s726_s7, %s726_s7 }
  0x3f   :  { %969 = vmatpush3.bf16.msra.mxu1 %v966_v11  ;;  %v85_v21 = vld [vmem:[%s1371_s0 + $0x18] sm:$0xff]  ;;  %v978_v23 = vpack.c.bf16 %v246_v20, %v245_v19  ;;  %v247_v24 = vld [vmem:[#allocation3 + $0x40] sm:$0xff]  ;;  %v88_v27 = vld [vmem:[%s1371_s0 + $0x30] sm:$0xff] }
  0x40   :  { %971 = vmatprep.subr.bf16.mxu1 %v970_v13  ;;  %v87_v26 = vld [vmem:[%s1371_s0 + $0x28] sm:$0xff]  ;;  %v982_v28 = vpack.c.bf16 %v248_v25, %v247_v24  ;;  %v249_v29 = vld [vmem:[#allocation3 + $0x50] sm:$0xff]  ;;  %v250_v30 = vld [vmem:[#allocation3 + $0x58] sm:$0xff]  ;;  %v1158_v25 = vmov 0.0  }
  0x41   :  { %965 = vmatpush3.bf16.msra.mxu0 %v962_v7  ;;  %v89_v31 = vld [vmem:[%s1371_s0 + $0x38] sm:$0xff]  ;;  %v986_v32 = vpack.c.bf16 %v250_v30, %v249_v29  ;;  %v251_v33 = vld [vmem:[#allocation3 + $0x60] sm:$0xff]  ;;  %v252_v34 = vld [vmem:[#allocation3 + $0x68] sm:$0xff] }
  0x42   :  { %v990_v35 = vpack.c.bf16 %v252_v34, %v251_v33  ;;  %v253_v36 = vld [vmem:[#allocation3 + $0x70] sm:$0xff]  ;;  %v254_v37 = vld [vmem:[#allocation3 + $0x78] sm:$0xff]  ;;  %v423_v0 = vld [vmem:[#allocation6] sm:$0xff]  ;;  %998 = vmatprep.subr.bf16.mxu0 %v1156_v3 }
  0x43   :  { %973 = vmatpush3.bf16.msra.mxu1 %v970_v13  ;;  %v994_v38 = vpack.c.bf16 %v254_v37, %v253_v36  ;;  %v735_v39 = vld [vmem:[%s1373_s2] ss:$0 sm:$0xff]  ;;  %v424_v1 = vld [vmem:[#allocation6 + $0x8] sm:$0xff]  ;;  %v425_v4 = vld [vmem:[#allocation6 + $0x10] sm:$0xff] }
  0x44   :  { %828 = vmatmul.mubr.msk.f32.vlgmr.msra.gmra.mrb[0].mxu0 %vm101_vm0, %v83_v16  ;;  %975 = vmatprep.subr.bf16.mxu1 %v974_v18  ;;  %v999_v2 = vpack.c.bf16 %v424_v1, %v423_v0  ;;  %v426_v5 = vld [vmem:[#allocation6 + $0x18] sm:$0xff]  ;;  %v427_v7 = vld [vmem:[#allocation6 + $0x20] sm:$0xff]  ;;  %v428_v8 = vld [vmem:[#allocation6 + $0x28] sm:$0xff] }
  0x45   :  { %830 = vmatprep.mubr.msk.f32.mxu0 %vm101_vm0, %v84_v17  ;;  %v1002_v6 = vpack.c.bf16 %v426_v5, %v425_v4  ;;  %v1005_v9 = vpack.c.bf16 %v428_v8, %v427_v7  ;;  %v429_v10 = vld [vmem:[#allocation6 + $0x30] sm:$0xff]  ;;  %v430_v11 = vld [vmem:[#allocation6 + $0x38] sm:$0xff]  ;;  %v431_v13 = vld [vmem:[#allocation6 + $0x40] sm:$0xff] }
  0x46   :  { %1000 = vmatpush3.bf16.msra.mxu0 %v999_v2  ;;  %v1008_v12 = vpack.c.bf16 %v430_v11, %v429_v10  ;;  %v432_v14 = vld [vmem:[#allocation6 + $0x48] sm:$0xff]  ;;  %v433_v16 = vld [vmem:[#allocation6 + $0x50] sm:$0xff]  ;;  %v434_v17 = vld [vmem:[#allocation6 + $0x58] sm:$0xff] }
  0x47   :  { %977 = vmatpush3.bf16.msra.mxu1 %v974_v18  ;;  %1001 = vmatprep.subr.bf16.mxu0 %v1156_v3  ;;  %v1011_v15 = vpack.c.bf16 %v432_v14, %v431_v13  ;;  %v1014_v18 = vpack.c.bf16 %v434_v17, %v433_v16  ;;  %v435_v19 = vld [vmem:[#allocation6 + $0x60] sm:$0xff]  ;;  %v436_v20 = vld [vmem:[#allocation6 + $0x68] sm:$0xff]  ;;  %v544_v30 = vld [vmem:[#allocation8 + $0x18] sm:$0xff] }
  0x48   :  { %831 = vmatmul.mubr.msk.f32.gmra.mrb[2].mxu0 %vm101_vm0, %v85_v21  ;;  %979 = vmatprep.subr.bf16.mxu1 %v978_v23  ;;  %v1017_v21 = vpack.c.bf16 %v436_v20, %v435_v19  ;;  %v546_v33 = vld [vmem:[#allocation8 + $0x28] sm:$0xff]  ;;  %v548_v36 = vld [vmem:[#allocation8 + $0x38] sm:$0xff] }
  0x49   :  { %833 = vmatprep.mubr.msk.f32.mxu0 %vm101_vm0, %v86_v22  ;;  %v437_v22 = vld [vmem:[#allocation6 + $0x70] sm:$0xff] }
  0x4a   :  { %1003 = vmatpush3.bf16.msra.mxu0 %v1002_v6 }
  0x4b   :  { %981 = vmatpush3.bf16.msra.mxu1 %v978_v23  ;;  %1004 = vmatprep.subr.bf16.mxu0 %v1156_v3  ;;  %v438_v23 = vld [vmem:[#allocation6 + $0x78] sm:$0xff] }
  0x4c   :  { %834 = vmatmul.mubr.msk.f32.gmra.mrb[4].mxu0 %vm101_vm0, %v87_v26  ;;  %983 = vmatprep.subr.bf16.mxu1 %v982_v28  ;;  %v1020_v24 = vpack.c.bf16 %v438_v23, %v437_v22  ;;  %v541_v26 = vld [vmem:[#allocation8] sm:$0xff] }
  0x4d   :  { %836 = vmatprep.mubr.msk.f32.mxu0 %vm101_vm0, %v88_v27  ;;  %v542_v27 = vld [vmem:[#allocation8 + $0x8] sm:$0xff] }
  0x4e   :  { %1006 = vmatpush3.bf16.msra.mxu0 %v1005_v9  ;;  %v1023_v29 = vpack.c.bf16 %v542_v27, %v541_v26 }
  0x4f   :  { %985 = vmatpush3.bf16.msra.mxu1 %v982_v28  ;;  %1007 = vmatprep.subr.bf16.mxu0 %v1156_v3  ;;  %v543_v28 = vld [vmem:[#allocation8 + $0x10] sm:$0xff] }
  0x50   :  { %837 = vmatmul.mubr.msk.f32.gmra.mrb[6].mxu0 %vm101_vm0, %v89_v31  ;;  %987 = vmatprep.subr.bf16.mxu1 %v986_v32  ;;  %v1026_v31 = vpack.c.bf16 %v544_v30, %v543_v28 }
  0x51   :  { %915 = vmatprep.mubr.msk.f32.mxu0 %vm1157_vm1, %v1158_v25 }
  0x52   :  { %1009 = vmatpush3.bf16.msra.mxu0 %v1008_v12 }
  0x53   :  { %989 = vmatpush3.bf16.msra.mxu1 %v986_v32  ;;  %1010 = vmatprep.subr.bf16.mxu0 %v1156_v3  ;;  %v545_v32 = vld [vmem:[#allocation8 + $0x20] sm:$0xff] }
  0x54   :  { %991 = vmatprep.subr.bf16.mxu1 %v990_v35  ;;  %v1029_v34 = vpack.c.bf16 %v546_v33, %v545_v32 }
  0x56   :  { %1012 = vmatpush3.bf16.msra.mxu0 %v1011_v15 }
  0x57   :  { %993 = vmatpush3.bf16.msra.mxu1 %v990_v35  ;;  %1013 = vmatprep.subr.bf16.mxu0 %v1156_v3  ;;  %v547_v35 = vld [vmem:[#allocation8 + $0x30] sm:$0xff] }
  0x58   :  { %995 = vmatprep.subr.bf16.mxu1 %v994_v38  ;;  %v1032_v37 = vpack.c.bf16 %v548_v36, %v547_v35 }
  0x5a   :  { %1015 = vmatpush3.bf16.msra.mxu0 %v1014_v18 }
  0x5b   :  { %997 = vmatpush3.bf16.msra.mxu1 %v994_v38  ;;  %1016 = vmatprep.subr.bf16.mxu0 %v1156_v3  ;;  %v549_v38 = vld [vmem:[#allocation8 + $0x40] sm:$0xff] }
  0x5c   :  { %1022 = vmatprep.subr.bf16.mxu1 %v1156_v3 }
  0x5e   :  { %1018 = vmatpush3.bf16.msra.mxu0 %v1017_v21 }
  0x5f   :  { %1019 = vmatprep.subr.bf16.mxu0 %v1156_v3 }
  0x62   :  { %1021 = vmatpush3.bf16.msra.mxu0 %v1020_v24 }
  0x63   :  { %953 = vmatprep.subr.mxu0 %v1158_v25 }
 0x117   :  { %v829_v40 = vpop.f32.mrb[0].mxu0 }
 0x118   :  { %v198_v41 = vadd.f32 %v829_v40, %v735_v39  ;;  %v192_v42 = vpop.f32.mrb[1].mxu0 }
 0x119   :  { %v193_v43 = vadd.f32 %v735_v39, %v192_v42  ;;  %v552_v42 = vld [vmem:[#allocation8 + $0x58] sm:$0xff] }
 0x11a   :  { %v232_v46 = vmax.f32 %v198_v41, 0.0  ;;  %v551_v41 = vld [vmem:[#allocation8 + $0x50] sm:$0xff] }
 0x11b   :  { %v832_v44 = vpop.f32.mrb[2].mxu0  ;;  %v231_v45 = vmax.f32 %v193_v43, 0.0  ;;  %v1038_v43 = vpack.c.bf16 %v552_v42, %v551_v41 }
 0x11c   :  { %v208_v47 = vadd.f32 %v832_v44, %v735_v39  ;;  %v202_v48 = vpop.f32.mrb[3].mxu0  ;;  %v744_v44 = vld [vmem:[%s1375_s4] ss:$0 sm:$0xff] }
 0x11d   :  { %v203_v49 = vadd.f32 %v735_v39, %v202_v48  ;;  %871 = vmatprep.mubr.f32.mxu1 %v231_v45 }
 0x11e   :  { %872 = vmatmul.mubr.f32.vlgmr.msra.gmra.mrb[0].mxu1 %v232_v46  ;;  %v234_v52 = vmax.f32 %v208_v47, 0.0 }
 0x11f   :  { %v233_v50 = vmax.f32 %v203_v49, 0.0  ;;  %v835_v51 = vpop.f32.mrb[4].mxu0  ;;  %1024 = vmatpush3.bf16.msra.mxu1 %v1023_v29 }
 0x120   :  { %v218_v53 = vadd.f32 %v835_v51, %v735_v39  ;;  %v212_v54 = vpop.f32.mrb[5].mxu0  ;;  %1025 = vmatprep.subr.bf16.mxu1 %v1156_v3 }
 0x121   :  { %v213_v55 = vadd.f32 %v735_v39, %v212_v54  ;;  %874 = vmatprep.mubr.f32.mxu1 %v233_v50 }
 0x122   :  { %875 = vmatmul.mubr.f32.gmra.mrb[2].mxu1 %v234_v52  ;;  %v236_v58 = vmax.f32 %v218_v53, 0.0 }
 0x123   :  { %v235_v56 = vmax.f32 %v213_v55, 0.0  ;;  %v838_v57 = vpop.f32.mrb[6].mxu0  ;;  %1027 = vmatpush3.bf16.msra.mxu1 %v1026_v31 }
 0x124   :  { %v228_v59 = vadd.f32 %v838_v57, %v735_v39  ;;  %v222_v60 = vpop.f32.mrb[7].mxu0  ;;  %1028 = vmatprep.subr.bf16.mxu1 %v1156_v3 }
 0x125   :  { %v223_v61 = vadd.f32 %v735_v39, %v222_v60  ;;  %877 = vmatprep.mubr.f32.mxu1 %v235_v56  ;;  %v550_v39 = vld [vmem:[#allocation8 + $0x48] sm:$0xff] }
 0x126   :  { %878 = vmatmul.mubr.f32.gmra.mrb[4].mxu1 %v236_v58  ;;  %v238_v63 = vmax.f32 %v228_v59, 0.0  ;;  %v1035_v40 = vpack.c.bf16 %v550_v39, %v549_v38 }
 0x127   :  { %v237_v62 = vmax.f32 %v223_v61, 0.0  ;;  %1030 = vmatpush3.bf16.msra.mxu1 %v1029_v34 }
 0x128   :  { %1031 = vmatprep.subr.bf16.mxu1 %v1156_v3 }
 0x129   :  { %880 = vmatprep.mubr.f32.mxu1 %v237_v62 }
 0x12a   :  { %881 = vmatmul.mubr.f32.gmra.mrb[6].mxu1 %v238_v63 }
 0x12b   :  { %950 = vmatprep.mubr.msk.f32.mxu1 %vm1157_vm1, %v1158_v25  ;;  %1033 = vmatpush3.bf16.msra.mxu1 %v1032_v37 }
 0x12c   :  { %1034 = vmatprep.subr.bf16.mxu1 %v1156_v3 }
 0x12f   :  { %1036 = vmatpush3.bf16.msra.mxu1 %v1035_v40 }
 0x130   :  { %1037 = vmatprep.subr.bf16.mxu1 %v1156_v3 }
 0x133   :  { %1039 = vmatpush3.bf16.msra.mxu1 %v1038_v43 }
 0x134   :  { %1040 = vmatprep.subr.bf16.mxu1 %v1156_v3 }
 0x1f1   :  { %v873_v45 = vpop.f32.mrb[0].mxu1 }
 0x1f2   :  { %v334_v46 = vadd.f32 %v873_v45, %v744_v44  ;;  %v328_v47 = vpop.f32.mrb[1].mxu1 }
 0x1f3   :  { %v329_v48 = vadd.f32 %v744_v44, %v328_v47 }
 0x1f4   :  { %v368_v49 = vmax.f32 %v334_v46, 0.0 }
 0x1f5   :  { %v367_v50 = vmax.f32 %v329_v48, 0.0  ;;  %v876_v51 = vpop.f32.mrb[2].mxu1 }
 0x1f6   :  { %v381_v52 = vrot.slane %v368_v49, 4  ;;  %v344_v53 = vadd.f32 %v876_v51, %v744_v44  ;;  %v338_v54 = vpop.f32.mrb[3].mxu1 }
 0x1f7   :  { %v375_v55 = vrot.slane %v367_v50, 4  ;;  %v339_v56 = vadd.f32 %v744_v44, %v338_v54 }
 0x1f8   :  { %v382_v57 = vadd.f32 %v381_v52, %v368_v49  ;;  %v370_v58 = vmax.f32 %v344_v53, 0.0 }
 0x1f9   :  { %v376_v59 = vadd.f32 %v375_v55, %v367_v50  ;;  %v369_v60 = vmax.f32 %v339_v56, 0.0  ;;  %v879_v61 = vpop.f32.mrb[4].mxu1 }
 0x1fa   :  { %v383_v62 = vrot.slane %v382_v57, 2  ;;  %v393_v63 = vrot.slane %v370_v58, 4  ;;  %v354_v0 = vadd.f32 %v879_v61, %v744_v44  ;;  %v348_v1 = vpop.f32.mrb[5].mxu1 }
 0x1fb   :  { %v377_v2 = vrot.slane %v376_v59, 2  ;;  %v387_v4 = vrot.slane %v369_v60, 4  ;;  %v349_v5 = vadd.f32 %v744_v44, %v348_v1  ;;  %v555_v1 = vld [vmem:[#allocation8 + $0x70] sm:$0xff] }
 0x1fc   :  { %v384_v6 = vadd.f32 %v383_v62, %v382_v57  ;;  %v394_v7 = vadd.f32 %v393_v63, %v370_v58  ;;  %v372_v8 = vmax.f32 %v354_v0, 0.0  ;;  %v553_v62 = vld [vmem:[#allocation8 + $0x60] sm:$0xff]  ;;  %v554_v63 = vld [vmem:[#allocation8 + $0x68] sm:$0xff] }
 0x1fd   :  { %v378_v9 = vadd.f32 %v377_v2, %v376_v59  ;;  %v388_v10 = vadd.f32 %v387_v4, %v369_v60  ;;  %v371_v11 = vmax.f32 %v349_v5, 0.0  ;;  %v882_v12 = vpop.f32.mrb[6].mxu1  ;;  %v1041_v0 = vpack.c.bf16 %v554_v63, %v553_v62  ;;  %v556_v2 = vld [vmem:[#allocation8 + $0x78] sm:$0xff] }
 0x1fe   :  { %v385_v13 = vrot.slane %v384_v6, 1  ;;  %v395_v14 = vrot.slane %v394_v7, 2  ;;  %v405_v15 = vrot.slane %v372_v8, 4  ;;  %v364_v16 = vadd.f32 %v882_v12, %v744_v44  ;;  %v358_v17 = vpop.f32.mrb[7].mxu1  ;;  %v745_v5 = vld [vmem:[%s1377_s6] ss:$0 sm:$0xff] }
 0x1ff   :  { %v379_v18 = vrot.slane %v378_v9, 1  ;;  %v389_v19 = vrot.slane %v388_v10, 2  ;;  %v399_v20 = vrot.slane %v371_v11, 4  ;;  %v359_v21 = vadd.f32 %v744_v44, %v358_v17  ;;  %1042 = vmatpush3.bf16.msra.mxu1 %v1041_v0  ;;  %v636_v17 = vld [vmem:[%s1380_s9] sm:$0x1] }
 0x200   :  { %v386_v22 = vadd.f32 %v385_v13, %v384_v6  ;;  %v396_v23 = vadd.f32 %v395_v14, %v394_v7  ;;  %v406_v24 = vadd.f32 %v405_v15, %v372_v8  ;;  %v374_v26 = vmax.f32 %v364_v16, 0.0  ;;  %1043 = vmatprep.subr.bf16.mxu1 %v1156_v3  ;;  %v746_v3 = vld [vmem:[%s1379_s8] ss:$0 sm:$0xff]  ;;  %s1123_s8 = scalar_lea.vmem %s726_s7, 16 }
 0x201   :  { %v380_v27 = vadd.f32 %v379_v18, %v378_v9  ;;  %v390_v28 = vadd.f32 %v389_v19, %v388_v10  ;;  %v400_v29 = vadd.f32 %v399_v20, %v371_v11  ;;  %v373_v30 = vmax.f32 %v359_v21, 0.0  ;;  %p1124_p10 = scmp.ne.s32.totalorder %s726_s7, %s1123_s8  ;;  %p1129_p12 = scmp.lt.s32.totalorder %s1127_s30, %s1123_s8 }
 0x202   :  { %v397_v31 = vrot.slane %v396_v23, 1  ;;  %v407_v32 = vrot.slane %v406_v24, 2  ;;  %v417_v33 = vrot.slane %v374_v26, 4  ;;  %v1044_v4 = vpack.c.bf16 %v556_v2, %v555_v1 }
 0x203   :  { %v455_v34 = vsel %vm454_vm2, %v386_v22, %v380_v27  ;;  %v391_v35 = vrot.slane %v390_v28, 1  ;;  %v401_v36 = vrot.slane %v400_v29, 2  ;;  %v411_v37 = vrot.slane %v373_v30, 4  ;;  %p1130_p13 = por %p1129_p12, %p1128_p11 }
 0x204   :  { %v408_v38 = vadd.f32 %v407_v32, %v406_v24  ;;  %v418_v39 = vadd.f32 %v417_v33, %v374_v26  ;;  %v398_v43 = vadd.f32 %v397_v31, %v396_v23  ;;  %1045 = vmatpush3.bf16.msra.mxu1 %v1044_v4  ;;  %v1159_v11 = vmov 0  }
 0x205   :  { %v392_v40 = vadd.f32 %v391_v35, %v390_v28  ;;  %v402_v41 = vadd.f32 %v401_v36, %v400_v29  ;;  %v412_v42 = vadd.f32 %v411_v37, %v373_v30  ;;  %1056 = vset.pattern.permute.xlu0 %v1159_v11  ;;  %v643_v18 = vlaneseq  ;;  %p1131_p0 = pnand %p1130_p13, %p1124_p10 }
 0x206   :  { %v409_v44 = vrot.slane %v408_v38, 1  ;;  %v419_v45 = vrot.slane %v418_v39, 2 }
 0x207   :  { %v457_v46 = vsel %vm456_vm3, %v392_v40, %v455_v34  ;;  %v403_v47 = vrot.slane %v402_v41, 1  ;;  %v413_v48 = vrot.slane %v412_v42, 2  ;;  %v644_v19 = vshrl.u32 %v643_v18, 7 }
 0x208   :  { %v459_v49 = vsel %vm458_vm4, %v398_v43, %v457_v46  ;;  %v420_v50 = vadd.f32 %v419_v45, %v418_v39  ;;  %v410_v53 = vadd.f32 %v409_v44, %v408_v38 }
 0x209   :  { %v404_v51 = vadd.f32 %v403_v47, %v402_v41  ;;  %v414_v52 = vadd.f32 %v413_v48, %v412_v42  ;;  %v645_v20 = vsub.s32 0, %v644_v19 }
 0x20a   :  { %v421_v54 = vrot.slane %v420_v50, 1 }
 0x20b   :  { %v461_v55 = vsel %vm460_vm5, %v404_v51, %v459_v49  ;;  %v415_v56 = vrot.slane %v414_v52, 1 }
 0x20c   :  { %v463_v57 = vsel %vm462_vm6, %v410_v53, %v461_v55  ;;  %v422_v59 = vadd.f32 %v421_v54, %v420_v50 }
 0x20d   :  { %v416_v58 = vadd.f32 %v415_v56, %v414_v52 }
 0x20f   :  { %v465_v60 = vsel %vm464_vm7, %v416_v58, %v463_v57 }
 0x210   :  { %v467_v61 = vsel %vm466_vm8, %v422_v59, %v465_v60 }
 0x211   :  { %916 = vmatmul.mubr.f32.vlgmr.msra.gmra.mrb[8].mxu0 %v467_v61 }
 0x212   :  { %955 = vmatprep.mubr.msk.f32.mxu0 %vm1157_vm1, %v1158_v25  ;;  %v637_v25 = vld [vmem:[#allocation2] sm:$0x1] }
 0x213   :  { %640 = vperm.xlu0 %1056, %v637_v25  }
 0x292   :  { %v641_v21 = vpop.permute.xlu0 %640 }
 0x293   :  { %v646_v22 = vrot.slane %v641_v21, %v645_v20 }
 0x2e4   :  { %v535_v6 = vpop.f32.mrb[8].mxu0 }
 0x2e5   :  { %v536_v7 = vadd.f32 %v745_v5, %v535_v6  ;;  %v917_v8 = vpop.f32.mrb[9].mxu0 }
 0x2e7   :  { %v539_v9 = vmax.f32 %v536_v7, 0.0 }
 0x2e9   :  { %v540_v10 = vadd.f32 %v539_v9, %v467_v61 }
 0x2eb   :  { %951 = vmatmul.mubr.f32.vlgmr.msra.gmra.mrb[8].mxu1 %v540_v10 }
 0x3be   :  { %v630_v12 = vpop.f32.mrb[8].mxu1 }
 0x3bf   :  { %v631_v13 = vadd.f32 %v746_v3, %v630_v12  ;;  %v952_v14 = vpop.f32.mrb[9].mxu1 }
 0x3c1   :  { %v634_v15 = vmax.f32 %v631_v13, 0.0 }
 0x3c3   :  { %v635_v16 = vadd.f32 %v634_v15, %v540_v10 }
 0x3c5   :  { %954 = vmatpush3.xpose.msra.mxu0 %v635_v16 }
 0x3c8   :  { %956 = vmatmul.mubr.f32.vlgmr.msra.gmra.mrb[10].mxu0 %v636_v17 }
 0x49b   :  { %v713_v23 = vpop.f32.mrb[10].mxu0 }
 0x49c   :  { %v714_v24 = vadd.f32 %v713_v23, %v646_v22  ;;  %v957_v26 = vpop.f32.mrb[11].mxu0 }
 0x49e   :  { %718 = vst.msk [vmem:[#allocation9] sm:$0x1] %vm717_vm9, %v714_v24 }
 0x49f   :  { %1134 = shalt.err (!%p1131_p0)
}
 0x4a0   :  { %s1135_s1 = scalar_lea.hbm %s1382_s11, 16 }
 0x4a1   :  { %p1136_p1 = scmp.ne.s32.totalorder %s1382_s11, %s1135_s1  ;;  %p1139_p2 = scmp.lt.u32.totalorder %s1135_s1, %s1382_s11 }
 0x4a3   :  { %p1141_p3 = pnand %p1139_p2, %p1136_p1 }
 0x4a5   :  { %1144 = shalt.err (!%p1141_p3)
}
 0x4a6   :  { %728 = dma.vmem_to_hbm [thread:$0]  %s726_s7, 16, %s1382_s11, [#allocation5]  }
 0x4a7   :  { %1149 = dma.done.wait [#allocation5], 16  }
 0x4a8   :  { %1150 = vsyncadd [#allocation5], 4294967280 }
 0x4a9   :  { %732 = vsyncpa [#allocation4], 1 }
 0x4aa   :  { %733 = vsyncpa [#allocation7], 1 }
 0x4ab   :  { %734 = vsyncpa [#allocation5], 1 }

</bundles_post_ra>
